<compile_context>
chip_gen: v5e
topology: v5e:2x2
jax: 0.10.0
libtpu: 0.0.40
codegen_flags: <defaults>
</compile_context>

<pallas_src>
import functools

import jax
import jax.numpy as jnp
from jax import lax
from jax.experimental import pallas as pl
from jax.experimental.pallas import tpu as pltpu


def _task_gnn_kernel(x_ref, mask_ref, bsel_ref, tiles_ref, bmask_ref,
                     w1_ref, ad1_ref, as1_ref, b1_ref,
                     w2_ref, ad2_ref, as2_ref, b2_ref,
                     out_ref, *, heads, d1, neg_slope):
    """Fused TaskGNN forward for one graph (one grid step).

    x_ref    : [N, F_in]    node features (f32)
    mask_ref : [N, N]       additive edge mask: 0 on edges (incl. self loops), -1e30 off
    bsel_ref : [H*N, H]     block one-hot: row r belongs to head r // N
    tiles_ref: [N, H*N]     lane-tiling matrix (eye(N) repeated H times along lanes)
    bmask_ref: [H*N, H*N]   block-diagonal 0/1 mask
    w1_ref   : [F_in, H*D]  head-fused conv1 weight (bf16)
    ad1_ref  : [D, H]       conv1 a_dst (transposed)
    as1_ref  : [H, H*D]     conv1 a_src, block-diagonal
    b1_ref   : [H, D]       conv1 bias
    w2_ref   : [H*D, D]     conv2 weight (bf16)
    ad2_ref  : [D, 1]       conv2 a_dst
    as2_ref  : [1, D]       conv2 a_src
    b2_ref   : [1, D]       conv2 bias
    out_ref  : [N, D]       final node embeddings
    """
    f32 = jnp.float32
    bf16 = jnp.bfloat16
    n = x_ref.shape[0]

    mask = mask_ref[...]                                   # [N, N]
    bsel = bsel_ref[...]                                   # [H*N, H]

    # ------------------------- layer 1 : H-head GAT -------------------------
    # Head-fused linear transform: one bf16 MXU pass, f32 accumulation.
    hh = jnp.dot(x_ref[...].astype(bf16), w1_ref[...],
                 preferred_element_type=f32)               # [N, H*D]
    # Head-stacked copy 'n (h d) -> (h n) d' via 128-aligned lane slices.
    hh_st = jnp.concatenate(
        [hh[:, h * d1:(h + 1) * d1] for h in range(heads)], axis=0)   # [H*N, D]

    # Attention scores for ALL heads at once.
    #   destination scores in column layout [H*N, 1] (node index on sublanes)
    dst_full = jnp.dot(hh_st, ad1_ref[...], preferred_element_type=f32)  # [H*N, H]
    dst_col = jnp.sum(dst_full * bsel, axis=1, keepdims=True)            # [H*N, 1]
    #   source scores in row layout [H, N], replicated into every head block
    src_t = lax.dot_general(as1_ref[...], hh, (((1,), (1,)), ((), ())),
                            preferred_element_type=f32)                  # [H, N]
    src_b = jnp.dot(bsel, src_t, preferred_element_type=f32)             # [H*N, N]

    # Head-batched masked softmax over the N source lanes (single fused pass).
    e = dst_col + src_b                                                   # [H*N, N]
    e = jnp.where(e > 0, e, neg_slope * e)                                # LeakyReLU
    e = e + jnp.concatenate([mask] * heads, axis=0)                       # edge mask
    m = jnp.max(e, axis=1, keepdims=True)
    p = jnp.exp(e - m)
    attn = p * pl.reciprocal(jnp.sum(p, axis=1, keepdims=True), approx=True)

    # Block-diagonal aggregation: build A_bd with one tiny MXU pass + mask,
    # then a single [H*N, H*N] @ [H*N, D] bf16 MXU pass with f32 accumulation.
    a_bd = jnp.dot(attn, tiles_ref[...],
                   preferred_element_type=f32) * bmask_ref[...]           # [H*N, H*N]
    o1 = jnp.dot(a_bd.astype(bf16), hh_st.astype(bf16),
                 preferred_element_type=f32)                              # [H*N, D]
    o1 = jnp.maximum(
        o1 + jnp.dot(bsel, b1_ref[...], preferred_element_type=f32), 0.0)
    # Un-stack back to the lane-dense [N, H*D] layout consumed by layer 2.
    h1 = jnp.concatenate([o1[h * n:(h + 1) * n, :] for h in range(heads)],
                         axis=1).astype(bf16)                             # [N, H*D]

    # TODO(synk): F.dropout(p=0.2, training=self.training) is stochastic;
    # applied here as identity (eval mode).

    # --------------------------- layer 2 : 1 head ---------------------------
    hh2 = jnp.dot(h1, w2_ref[...], preferred_element_type=f32)            # [N, D]
    dst2 = jnp.dot(hh2, ad2_ref[...], preferred_element_type=f32)         # [N, 1]
    src2 = lax.dot_general(as2_ref[...], hh2, (((1,), (1,)), ((), ())),
                           preferred_element_type=f32)                    # [1, N]
    e2 = dst2 + src2
    e2 = jnp.where(e2 > 0, e2, neg_slope * e2) + mask
    m2 = jnp.max(e2, axis=1, keepdims=True)
    p2 = jnp.exp(e2 - m2)
    attn2 = p2 * pl.reciprocal(jnp.sum(p2, axis=1, keepdims=True), approx=True)
    o2 = jnp.dot(attn2, hh2, preferred_element_type=f32) + b2_ref[...]    # [N, D]
    out_ref[...] = jnp.maximum(o2, 0.0).astype(out_ref.dtype)


def _pack_params(params):
    """Repack per-head GATConv params into the kernel's fused layouts."""
    w1 = params["w1"]                                         # [H, F, D]
    h, f_in, d = w1.shape
    w1f = jnp.transpose(w1, (1, 0, 2)).reshape(f_in, h * d).astype(jnp.bfloat16)
    ad1 = params["a_dst1"].T.astype(jnp.float32)              # [D, H]
    eye = jnp.eye(h, dtype=jnp.float32)
    as1 = (eye[:, :, None] * params["a_src1"][None, :, :]).reshape(h, h * d)
    b1 = params["b1"].astype(jnp.float32)                     # [H, D]
    w2f = params["w2"][0].astype(jnp.bfloat16)                # [H*D, D2]
    ad2 = params["a_dst2"].T.astype(jnp.float32)              # [D2, 1]
    as2 = params["a_src2"].astype(jnp.float32)                # [1, D2]
    b2 = params["b2"].astype(jnp.float32)                     # [1, D2]
    return (w1f, ad1, as1.astype(jnp.float32), b1, w2f, ad2, as2, b2)


def task_gnn_forward_batched(x, adj_mask, params, *, hidden_dim, n_heads):
    """x: [G, N, F] node features; adj_mask: [G, N, N] additive mask (0 / -1e30)."""
    g, n, f_in = x.shape

    # Constant selection matrices (kept VMEM-resident across the graph grid).
    blk = jnp.repeat(jnp.arange(n_heads), n)
    bsel = (blk[:, None] == jnp.arange(n_heads)[None, :]).astype(jnp.float32)  # [H*N, H]
    tiles = jnp.tile(jnp.eye(n, dtype=jnp.float32), (1, n_heads))              # [N, H*N]
    bmask = (blk[:, None] == blk[None, :]).astype(jnp.float32)                 # [H*N, H*N]
    consts = (bsel, tiles, bmask) + _pack_params(params)

    kernel = functools.partial(_task_gnn_kernel, heads=n_heads,
                               d1=hidden_dim, neg_slope=0.2)
    per_graph = [pl.BlockSpec((None, n, f_in), lambda i: (i, 0, 0)),
                 pl.BlockSpec((None, n, n), lambda i: (i, 0, 0))]
    resident = [pl.BlockSpec(a.shape, lambda i: (0, 0)) for a in consts]

    return pl.pallas_call(
        kernel,
        out_shape=jax.ShapeDtypeStruct((g, n, hidden_dim), jnp.float32),
        grid=(g,),
        in_specs=per_graph + resident,
        out_specs=pl.BlockSpec((None, n, hidden_dim), lambda i: (i, 0, 0)),
        compiler_params=pltpu.CompilerParams(
            dimension_semantics=("parallel",)),       # 2-TC sharding on v7x
    )(x, adj_mask, *consts)


def edge_index_to_adj(edge_index, n):
    # GATConv removes then re-adds self loops; adj[dst, src] = 1.
    adj = jnp.zeros((n, n), jnp.float32).at[edge_index[1], edge_index[0]].set(1.0)
    return jnp.maximum(adj, jnp.eye(n, dtype=jnp.float32))


def adj_to_additive_mask(adj):
    return jnp.where(adj > 0, 0.0, -1e30).astype(jnp.float32)


def task_gnn_forward(x, edge_index, params, *, hidden_dim, n_heads):
    if x.shape[0] == 0 or edge_index.size == 0:
        # PyTorch returns torch.tensor([]); return a shape-consistent empty array.
        return jnp.zeros((0, hidden_dim), jnp.float32)
    n = x.shape[0]
    mask = adj_to_additive_mask(edge_index_to_adj(edge_index, n))
    out = task_gnn_forward_batched(x[None], mask[None], params,
                                   hidden_dim=hidden_dim, n_heads=n_heads)
    return out[0]


def init_task_gnn_params(key, input_dim=4, hidden_dim=128, n_heads=8):
    """Deterministic synthetic parameters matching GATConv shapes (per head)."""
    ks = jax.random.split(key, 6)

    def glorot(k, shape, fan_in, fan_out):
        lim = (6.0 / (fan_in + fan_out)) ** 0.5
        return jax.random.uniform(k, shape, jnp.float32, -lim, lim)

    return {
        # conv1: GATConv(input_dim, hidden_dim, heads=n_heads)
        "w1": glorot(ks[0], (n_heads, input_dim, hidden_dim),
                     input_dim, n_heads * hidden_dim),
        "a_src1": glorot(ks[1], (n_heads, hidden_dim), hidden_dim, 1),
        "a_dst1": glorot(ks[2], (n_heads, hidden_dim), hidden_dim, 1),
        "b1": jnp.zeros((n_heads, hidden_dim), jnp.float32),
        # conv2: GATConv(hidden_dim*n_heads, hidden_dim, heads=1)
        "w2": glorot(ks[3], (1, n_heads * hidden_dim, hidden_dim),
                     n_heads * hidden_dim, hidden_dim),
        "a_src2": glorot(ks[4], (1, hidden_dim), hidden_dim, 1),
        "a_dst2": glorot(ks[5], (1, hidden_dim), hidden_dim, 1),
        "b2": jnp.zeros((1, hidden_dim), jnp.float32),
    }


def _gat_ref(x, adj, w, a_src, a_dst, bias, heads, out_dim, apply_relu,
             neg_slope=0.2):
    """Pure-JAX dense reference for one GAT layer (same math, for checking)."""
    n = x.shape[0]
    h = jnp.einsum("nf,hfd->nhd", x, w)                       # [N, H, D]
    ad = jnp.einsum("nhd,hd->nh", h, a_dst)
    asr = jnp.einsum("nhd,hd->nh", h, a_src)
    e = ad[:, None, :] + asr[None, :, :]                      # [N_dst, N_src, H]
    e = jnp.where(e > 0, e, neg_slope * e)
    e = jnp.where(adj[:, :, None] > 0, e, -1e30)
    attn = jax.nn.softmax(e, axis=1)
    out = jnp.einsum("ijh,jhd->ihd", attn, h) + bias[None]    # [N, H, D]
    out = out.reshape(n, heads * out_dim)
    return jnp.maximum(out, 0.0) if apply_relu else out


if __name__ == "__main__":
    key = jax.random.PRNGKey(0)
    kx, kp, kb = jax.random.split(key, 3)

    # Module defaults: input_dim=4, hidden_dim=128, n_heads=8; small graph N=16.
    N, INPUT_DIM, HIDDEN_DIM, N_HEADS = 16, 4, 128, 8

    x = jax.random.normal(kx, (N, INPUT_DIM), jnp.float32)
    # Bidirectional ring graph: edge_index is [2, E] = [src; dst].
    src = jnp.arange(N, dtype=jnp.int32)
    dst = (src + 1) % N
    edge_index = jnp.stack([jnp.concatenate([src, dst]),
                            jnp.concatenate([dst, src])], axis=0)   # [2, 2N]

    params = init_task_gnn_params(kp, INPUT_DIM, HIDDEN_DIM, N_HEADS)

    # --- single graph (module semantics) ------------------------------------
    out = task_gnn_forward(x, edge_index, params,
                           hidden_dim=HIDDEN_DIM, n_heads=N_HEADS)
    out = jax.block_until_ready(out)
    assert out.shape == (N, HIDDEN_DIM)

    # Reference with the same bf16-rounded weights (kernel stores W in bf16).
    def q(a):
        return a.astype(jnp.bfloat16).astype(jnp.float32)

    adj = edge_index_to_adj(edge_index, N)
    r1 = _gat_ref(x, adj, q(params["w1"]), params["a_src1"], params["a_dst1"],
                  params["b1"], N_HEADS, HIDDEN_DIM, True)
    r2 = _gat_ref(r1, adj, q(params["w2"]), params["a_src2"], params["a_dst2"],
                  params["b2"], 1, HIDDEN_DIM, True)
    max_err = float(jnp.max(jnp.abs(out - r2)))
    assert max_err < 2e-2, f"kernel/reference mismatch: {max_err}"

    # --- batched graphs over the grid axis (weights stay resident) ----------
    G = 4
    xb = jax.random.normal(kb, (G, N, INPUT_DIM), jnp.float32)
    maskb = jnp.broadcast_to(adj_to_additive_mask(adj)[None], (G, N, N))
    outb = jax.block_until_ready(
        task_gnn_forward_batched(xb, maskb, params,
                                 hidden_dim=HIDDEN_DIM, n_heads=N_HEADS))
    assert outb.shape == (G, N, HIDDEN_DIM)
    g_chk = 2
    rb1 = _gat_ref(xb[g_chk], adj, q(params["w1"]), params["a_src1"],
                   params["a_dst1"], params["b1"], N_HEADS, HIDDEN_DIM, True)
    rb2 = _gat_ref(rb1, adj, q(params["w2"]), params["a_src2"],
                   params["a_dst2"], params["b2"], 1, HIDDEN_DIM, True)
    max_err_b = float(jnp.max(jnp.abs(outb[g_chk] - rb2)))
    assert max_err_b < 2e-2, f"batched kernel/reference mismatch: {max_err_b}"

    print("KERNEL_OK")
</pallas_src>

<mosaic_0001>
module attributes {stable_mosaic.version = 11 : i64} {
  func.func @_task_gnn_kernel(%arg0: i32, %arg1: memref<1x16x4xf32, #tpu.memory_space<vmem>>, %arg2: memref<1x16x16xf32, #tpu.memory_space<vmem>>, %arg3: memref<128x8xf32, #tpu.memory_space<vmem>>, %arg4: memref<16x128xf32, #tpu.memory_space<vmem>>, %arg5: memref<128x128xf32, #tpu.memory_space<vmem>>, %arg6: memref<4x1024xbf16, #tpu.memory_space<vmem>>, %arg7: memref<128x8xf32, #tpu.memory_space<vmem>>, %arg8: memref<8x1024xf32, #tpu.memory_space<vmem>>, %arg9: memref<8x128xf32, #tpu.memory_space<vmem>>, %arg10: memref<1024x128xbf16, #tpu.memory_space<vmem>>, %arg11: memref<128x1xf32, #tpu.memory_space<vmem>>, %arg12: memref<1x128xf32, #tpu.memory_space<vmem>>, %arg13: memref<1x128xf32, #tpu.memory_space<vmem>>, %arg14: memref<1x16x128xf32, #tpu.memory_space<vmem>>) attributes {dimension_semantics = [#tpu.dimension_semantics<parallel>], iteration_bounds = array<i64: 1>, scalar_prefetch = 0 : i64, scratch_operands = 0 : i64, tpu.core_type = #tpu.core_type<tc>, window_params = [{transform_indices = @transform_0, window_bounds = array<i64: 1, 16, 4>}, {transform_indices = @transform_1, window_bounds = array<i64: 1, 16, 16>}, {pipeline_mode = #tpu.pipeline_mode<synchronous>, transform_indices = @transform_2, window_bounds = array<i64: 128, 8>}, {pipeline_mode = #tpu.pipeline_mode<synchronous>, transform_indices = @transform_3, window_bounds = array<i64: 16, 128>}, {pipeline_mode = #tpu.pipeline_mode<synchronous>, transform_indices = @transform_4, window_bounds = array<i64: 128, 128>}, {pipeline_mode = #tpu.pipeline_mode<synchronous>, transform_indices = @transform_5, window_bounds = array<i64: 4, 1024>}, {pipeline_mode = #tpu.pipeline_mode<synchronous>, transform_indices = @transform_6, window_bounds = array<i64: 128, 8>}, {pipeline_mode = #tpu.pipeline_mode<synchronous>, transform_indices = @transform_7, window_bounds = array<i64: 8, 1024>}, {pipeline_mode = #tpu.pipeline_mode<synchronous>, transform_indices = @transform_8, window_bounds = array<i64: 8, 128>}, {pipeline_mode = #tpu.pipeline_mode<synchronous>, transform_indices = @transform_9, window_bounds = array<i64: 1024, 128>}, {pipeline_mode = #tpu.pipeline_mode<synchronous>, transform_indices = @transform_10, window_bounds = array<i64: 128, 1>}, {pipeline_mode = #tpu.pipeline_mode<synchronous>, transform_indices = @transform_11, window_bounds = array<i64: 1, 128>}, {pipeline_mode = #tpu.pipeline_mode<synchronous>, transform_indices = @transform_12, window_bounds = array<i64: 1, 128>}, {transform_indices = @transform_13, window_bounds = array<i64: 1, 16, 128>}]} {
    %c0 = arith.constant 0 : index
    %c0_0 = arith.constant 0 : index
    %c0_1 = arith.constant 0 : index
    %0 = vector.load %arg2[%c0, %c0_0, %c0_1] : memref<1x16x16xf32, #tpu.memory_space<vmem>>, vector<1x16x16xf32>
    %1 = vector.shape_cast %0 : vector<1x16x16xf32> to vector<16x16xf32>
    %c0_2 = arith.constant 0 : index
    %c0_3 = arith.constant 0 : index
    %2 = vector.load %arg3[%c0_2, %c0_3] : memref<128x8xf32, #tpu.memory_space<vmem>>, vector<128x8xf32>
    %c0_4 = arith.constant 0 : index
    %c0_5 = arith.constant 0 : index
    %c0_6 = arith.constant 0 : index
    %3 = vector.load %arg1[%c0_4, %c0_5, %c0_6] : memref<1x16x4xf32, #tpu.memory_space<vmem>>, vector<1x16x4xf32>
    %4 = vector.shape_cast %3 : vector<1x16x4xf32> to vector<16x4xf32>
    %5 = arith.truncf %4 : vector<16x4xf32> to vector<16x4xbf16>
    %c0_7 = arith.constant 0 : index
    %c0_8 = arith.constant 0 : index
    %6 = vector.load %arg6[%c0_7, %c0_8] : memref<4x1024xbf16, #tpu.memory_space<vmem>>, vector<4x1024xbf16>
    %cst = arith.constant dense<0.000000e+00> : vector<16x1024xf32>
    %7 = tpu.matmul %5, %6, %cst {dimension_numbers = #tpu.dot_dimension_numbers<[1], [0], [0], [1], [0, 0, 1, 1], [], []>} : vector<16x4xbf16>, vector<4x1024xbf16>, vector<16x1024xf32> -> vector<16x1024xf32>
    %8 = vector.extract_strided_slice %7 {offsets = [0, 0], sizes = [16, 128], strides = [1, 1]} : vector<16x1024xf32> to vector<16x128xf32>
    %9 = vector.extract_strided_slice %7 {offsets = [0, 128], sizes = [16, 128], strides = [1, 1]} : vector<16x1024xf32> to vector<16x128xf32>
    %10 = vector.extract_strided_slice %7 {offsets = [0, 256], sizes = [16, 128], strides = [1, 1]} : vector<16x1024xf32> to vector<16x128xf32>
    %11 = vector.extract_strided_slice %7 {offsets = [0, 384], sizes = [16, 128], strides = [1, 1]} : vector<16x1024xf32> to vector<16x128xf32>
    %12 = vector.extract_strided_slice %7 {offsets = [0, 512], sizes = [16, 128], strides = [1, 1]} : vector<16x1024xf32> to vector<16x128xf32>
    %13 = vector.extract_strided_slice %7 {offsets = [0, 640], sizes = [16, 128], strides = [1, 1]} : vector<16x1024xf32> to vector<16x128xf32>
    %14 = vector.extract_strided_slice %7 {offsets = [0, 768], sizes = [16, 128], strides = [1, 1]} : vector<16x1024xf32> to vector<16x128xf32>
    %15 = vector.extract_strided_slice %7 {offsets = [0, 896], sizes = [16, 128], strides = [1, 1]} : vector<16x1024xf32> to vector<16x128xf32>
    %16 = tpu.concatenate %8, %9, %10, %11, %12, %13, %14, %15 in 0 : vector<16x128xf32>, vector<16x128xf32>, vector<16x128xf32>, vector<16x128xf32>, vector<16x128xf32>, vector<16x128xf32>, vector<16x128xf32>, vector<16x128xf32> -> vector<128x128xf32>
    %c0_9 = arith.constant 0 : index
    %c0_10 = arith.constant 0 : index
    %17 = vector.load %arg7[%c0_9, %c0_10] : memref<128x8xf32, #tpu.memory_space<vmem>>, vector<128x8xf32>
    %cst_11 = arith.constant dense<0.000000e+00> : vector<128x8xf32>
    %18 = tpu.matmul %16, %17, %cst_11 {dimension_numbers = #tpu.dot_dimension_numbers<[1], [0], [0], [1], [0, 0, 1, 1], [], []>} : vector<128x128xf32>, vector<128x8xf32>, vector<128x8xf32> -> vector<128x8xf32>
    %19 = arith.mulf %18, %2 : vector<128x8xf32>
    %cst_12 = arith.constant dense<0.000000e+00> : vector<128xf32>
    %20 = vector.multi_reduction <add>, %19, %cst_12 [1] : vector<128x8xf32> to vector<128xf32>
    %21 = vector.shape_cast %20 : vector<128xf32> to vector<128x1xf32>
    %c0_13 = arith.constant 0 : index
    %c0_14 = arith.constant 0 : index
    %22 = vector.load %arg8[%c0_13, %c0_14] : memref<8x1024xf32, #tpu.memory_space<vmem>>, vector<8x1024xf32>
    %cst_15 = arith.constant dense<0.000000e+00> : vector<8x16xf32>
    %23 = tpu.matmul %22, %7, %cst_15 {dimension_numbers = #tpu.dot_dimension_numbers<[1], [1], [0], [0], [0, 0, 1, 0], [], []>} : vector<8x1024xf32>, vector<16x1024xf32>, vector<8x16xf32> -> vector<8x16xf32>
    %cst_16 = arith.constant dense<0.000000e+00> : vector<128x16xf32>
    %24 = tpu.matmul %2, %23, %cst_16 {dimension_numbers = #tpu.dot_dimension_numbers<[1], [0], [0], [1], [0, 0, 1, 1], [], []>} : vector<128x8xf32>, vector<8x16xf32>, vector<128x16xf32> -> vector<128x16xf32>
    %25 = vector.broadcast %21 : vector<128x1xf32> to vector<128x16xf32>
    %26 = arith.addf %25, %24 : vector<128x16xf32>
    %cst_17 = arith.constant 0.000000e+00 : f32
    %27 = vector.broadcast %cst_17 : f32 to vector<128x16xf32>
    %28 = arith.cmpf ogt, %26, %27 : vector<128x16xf32>
    %cst_18 = arith.constant 2.000000e-01 : f32
    %29 = vector.broadcast %cst_18 : f32 to vector<128x16xf32>
    %30 = arith.mulf %29, %26 : vector<128x16xf32>
    %31 = arith.select %28, %26, %30 : vector<128x16xi1>, vector<128x16xf32>
    %32 = tpu.concatenate %1, %1, %1, %1, %1, %1, %1, %1 in 0 : vector<16x16xf32>, vector<16x16xf32>, vector<16x16xf32>, vector<16x16xf32>, vector<16x16xf32>, vector<16x16xf32>, vector<16x16xf32>, vector<16x16xf32> -> vector<128x16xf32>
    %33 = arith.addf %31, %32 : vector<128x16xf32>
    %cst_19 = arith.constant dense<0xFF800000> : vector<128xf32>
    %34 = vector.multi_reduction <maximumf>, %33, %cst_19 [1] : vector<128x16xf32> to vector<128xf32>
    %35 = vector.shape_cast %34 : vector<128xf32> to vector<128x1xf32>
    %36 = vector.broadcast %35 : vector<128x1xf32> to vector<128x16xf32>
    %37 = arith.subf %33, %36 : vector<128x16xf32>
    %38 = math.exp %37 : vector<128x16xf32>
    %cst_20 = arith.constant dense<0.000000e+00> : vector<128xf32>
    %39 = vector.multi_reduction <add>, %38, %cst_20 [1] : vector<128x16xf32> to vector<128xf32>
    %40 = vector.shape_cast %39 : vector<128xf32> to vector<128x1xf32>
    %41 = tpu.reciprocal %40 {approx = true} : vector<128x1xf32> -> vector<128x1xf32>
    %42 = vector.broadcast %41 : vector<128x1xf32> to vector<128x16xf32>
    %43 = arith.mulf %38, %42 : vector<128x16xf32>
    %c0_21 = arith.constant 0 : index
    %c0_22 = arith.constant 0 : index
    %44 = vector.load %arg4[%c0_21, %c0_22] : memref<16x128xf32, #tpu.memory_space<vmem>>, vector<16x128xf32>
    %cst_23 = arith.constant dense<0.000000e+00> : vector<128x128xf32>
    %45 = tpu.matmul %43, %44, %cst_23 {dimension_numbers = #tpu.dot_dimension_numbers<[1], [0], [0], [1], [0, 0, 1, 1], [], []>} : vector<128x16xf32>, vector<16x128xf32>, vector<128x128xf32> -> vector<128x128xf32>
    %c0_24 = arith.constant 0 : index
    %c0_25 = arith.constant 0 : index
    %46 = vector.load %arg5[%c0_24, %c0_25] : memref<128x128xf32, #tpu.memory_space<vmem>>, vector<128x128xf32>
    %47 = arith.mulf %45, %46 : vector<128x128xf32>
    %48 = arith.truncf %47 : vector<128x128xf32> to vector<128x128xbf16>
    %49 = arith.truncf %16 : vector<128x128xf32> to vector<128x128xbf16>
    %cst_26 = arith.constant dense<0.000000e+00> : vector<128x128xf32>
    %50 = tpu.matmul %48, %49, %cst_26 {dimension_numbers = #tpu.dot_dimension_numbers<[1], [0], [0], [1], [0, 0, 1, 1], [], []>} : vector<128x128xbf16>, vector<128x128xbf16>, vector<128x128xf32> -> vector<128x128xf32>
    %c0_27 = arith.constant 0 : index
    %c0_28 = arith.constant 0 : index
    %51 = vector.load %arg9[%c0_27, %c0_28] : memref<8x128xf32, #tpu.memory_space<vmem>>, vector<8x128xf32>
    %cst_29 = arith.constant dense<0.000000e+00> : vector<128x128xf32>
    %52 = tpu.matmul %2, %51, %cst_29 {dimension_numbers = #tpu.dot_dimension_numbers<[1], [0], [0], [1], [0, 0, 1, 1], [], []>} : vector<128x8xf32>, vector<8x128xf32>, vector<128x128xf32> -> vector<128x128xf32>
    %53 = arith.addf %50, %52 : vector<128x128xf32>
    %cst_30 = arith.constant 0.000000e+00 : f32
    %54 = vector.broadcast %cst_30 : f32 to vector<128x128xf32>
    %55 = arith.maximumf %53, %54 : vector<128x128xf32>
    %56 = vector.extract_strided_slice %55 {offsets = [0, 0], sizes = [16, 128], strides = [1, 1]} : vector<128x128xf32> to vector<16x128xf32>
    %57 = vector.extract_strided_slice %55 {offsets = [16, 0], sizes = [16, 128], strides = [1, 1]} : vector<128x128xf32> to vector<16x128xf32>
    %58 = vector.extract_strided_slice %55 {offsets = [32, 0], sizes = [16, 128], strides = [1, 1]} : vector<128x128xf32> to vector<16x128xf32>
    %59 = vector.extract_strided_slice %55 {offsets = [48, 0], sizes = [16, 128], strides = [1, 1]} : vector<128x128xf32> to vector<16x128xf32>
    %60 = vector.extract_strided_slice %55 {offsets = [64, 0], sizes = [16, 128], strides = [1, 1]} : vector<128x128xf32> to vector<16x128xf32>
    %61 = vector.extract_strided_slice %55 {offsets = [80, 0], sizes = [16, 128], strides = [1, 1]} : vector<128x128xf32> to vector<16x128xf32>
    %62 = vector.extract_strided_slice %55 {offsets = [96, 0], sizes = [16, 128], strides = [1, 1]} : vector<128x128xf32> to vector<16x128xf32>
    %63 = vector.extract_strided_slice %55 {offsets = [112, 0], sizes = [16, 128], strides = [1, 1]} : vector<128x128xf32> to vector<16x128xf32>
    %64 = tpu.concatenate %56, %57, %58, %59, %60, %61, %62, %63 in 1 : vector<16x128xf32>, vector<16x128xf32>, vector<16x128xf32>, vector<16x128xf32>, vector<16x128xf32>, vector<16x128xf32>, vector<16x128xf32>, vector<16x128xf32> -> vector<16x1024xf32>
    %65 = arith.truncf %64 : vector<16x1024xf32> to vector<16x1024xbf16>
    %c0_31 = arith.constant 0 : index
    %c0_32 = arith.constant 0 : index
    %66 = vector.load %arg10[%c0_31, %c0_32] : memref<1024x128xbf16, #tpu.memory_space<vmem>>, vector<1024x128xbf16>
    %cst_33 = arith.constant dense<0.000000e+00> : vector<16x128xf32>
    %67 = tpu.matmul %65, %66, %cst_33 {dimension_numbers = #tpu.dot_dimension_numbers<[1], [0], [0], [1], [0, 0, 1, 1], [], []>} : vector<16x1024xbf16>, vector<1024x128xbf16>, vector<16x128xf32> -> vector<16x128xf32>
    %c0_34 = arith.constant 0 : index
    %c0_35 = arith.constant 0 : index
    %68 = vector.load %arg11[%c0_34, %c0_35] : memref<128x1xf32, #tpu.memory_space<vmem>>, vector<128x1xf32>
    %cst_36 = arith.constant dense<0.000000e+00> : vector<16x1xf32>
    %69 = tpu.matmul %67, %68, %cst_36 {dimension_numbers = #tpu.dot_dimension_numbers<[1], [0], [0], [1], [0, 0, 1, 1], [], []>} : vector<16x128xf32>, vector<128x1xf32>, vector<16x1xf32> -> vector<16x1xf32>
    %c0_37 = arith.constant 0 : index
    %c0_38 = arith.constant 0 : index
    %70 = vector.load %arg12[%c0_37, %c0_38] : memref<1x128xf32, #tpu.memory_space<vmem>>, vector<1x128xf32>
    %cst_39 = arith.constant dense<0.000000e+00> : vector<1x16xf32>
    %71 = tpu.matmul %70, %67, %cst_39 {dimension_numbers = #tpu.dot_dimension_numbers<[1], [1], [0], [0], [0, 0, 1, 0], [], []>} : vector<1x128xf32>, vector<16x128xf32>, vector<1x16xf32> -> vector<1x16xf32>
    %72 = vector.broadcast %69 : vector<16x1xf32> to vector<16x16xf32>
    %73 = vector.broadcast %71 : vector<1x16xf32> to vector<16x16xf32>
    %74 = arith.addf %72, %73 : vector<16x16xf32>
    %cst_40 = arith.constant 0.000000e+00 : f32
    %75 = vector.broadcast %cst_40 : f32 to vector<16x16xf32>
    %76 = arith.cmpf ogt, %74, %75 : vector<16x16xf32>
    %cst_41 = arith.constant 2.000000e-01 : f32
    %77 = vector.broadcast %cst_41 : f32 to vector<16x16xf32>
    %78 = arith.mulf %77, %74 : vector<16x16xf32>
    %79 = arith.select %76, %74, %78 : vector<16x16xi1>, vector<16x16xf32>
    %80 = arith.addf %79, %1 : vector<16x16xf32>
    %cst_42 = arith.constant dense<0xFF800000> : vector<16xf32>
    %81 = vector.multi_reduction <maximumf>, %80, %cst_42 [1] : vector<16x16xf32> to vector<16xf32>
    %82 = vector.shape_cast %81 : vector<16xf32> to vector<16x1xf32>
    %83 = vector.broadcast %82 : vector<16x1xf32> to vector<16x16xf32>
    %84 = arith.subf %80, %83 : vector<16x16xf32>
    %85 = math.exp %84 : vector<16x16xf32>
    %cst_43 = arith.constant dense<0.000000e+00> : vector<16xf32>
    %86 = vector.multi_reduction <add>, %85, %cst_43 [1] : vector<16x16xf32> to vector<16xf32>
    %87 = vector.shape_cast %86 : vector<16xf32> to vector<16x1xf32>
    %88 = tpu.reciprocal %87 {approx = true} : vector<16x1xf32> -> vector<16x1xf32>
    %89 = vector.broadcast %88 : vector<16x1xf32> to vector<16x16xf32>
    %90 = arith.mulf %85, %89 : vector<16x16xf32>
    %cst_44 = arith.constant dense<0.000000e+00> : vector<16x128xf32>
    %91 = tpu.matmul %90, %67, %cst_44 {dimension_numbers = #tpu.dot_dimension_numbers<[1], [0], [0], [1], [0, 0, 1, 1], [], []>} : vector<16x16xf32>, vector<16x128xf32>, vector<16x128xf32> -> vector<16x128xf32>
    %c0_45 = arith.constant 0 : index
    %c0_46 = arith.constant 0 : index
    %92 = vector.load %arg13[%c0_45, %c0_46] : memref<1x128xf32, #tpu.memory_space<vmem>>, vector<1x128xf32>
    %93 = vector.broadcast %92 : vector<1x128xf32> to vector<16x128xf32>
    %94 = arith.addf %91, %93 : vector<16x128xf32>
    %cst_47 = arith.constant 0.000000e+00 : f32
    %95 = vector.broadcast %cst_47 : f32 to vector<16x128xf32>
    %96 = arith.maximumf %94, %95 : vector<16x128xf32>
    %c0_48 = arith.constant 0 : index
    %c0_49 = arith.constant 0 : index
    %c0_50 = arith.constant 0 : index
    %97 = vector.load %arg14[%c0_48, %c0_49, %c0_50] : memref<1x16x128xf32, #tpu.memory_space<vmem>>, vector<1x16x128xf32>
    %98 = vector.shape_cast %97 : vector<1x16x128xf32> to vector<16x128xf32>
    %99 = vector.shape_cast %96 : vector<16x128xf32> to vector<1x16x128xf32>
    tpu.vector_store %arg14[%c0_48, %c0_49, %c0_50], %99 {strides = array<i32>} : memref<1x16x128xf32, #tpu.memory_space<vmem>>, vector<1x16x128xf32>,
    return
  }
  func.func @transform_0(%arg0: i32) -> (i32, i32, i32) {
    %c0_i32 = arith.constant 0 : i32
    %c0_i32_0 = arith.constant 0 : i32
    %c0_i32_1 = arith.constant 0 : i32
    return %arg0, %c0_i32, %c0_i32_0 : i32, i32, i32
  }
  func.func @transform_1(%arg0: i32) -> (i32, i32, i32) {
    %c0_i32 = arith.constant 0 : i32
    %c0_i32_0 = arith.constant 0 : i32
    %c0_i32_1 = arith.constant 0 : i32
    return %arg0, %c0_i32, %c0_i32_0 : i32, i32, i32
  }
  func.func @transform_2(%arg0: i32) -> (i32, i32) {
    %c0_i32 = arith.constant 0 : i32
    %c0_i32_0 = arith.constant 0 : i32
    %c0_i32_1 = arith.constant 0 : i32
    return %c0_i32, %c0_i32_0 : i32, i32
  }
  func.func @transform_3(%arg0: i32) -> (i32, i32) {
    %c0_i32 = arith.constant 0 : i32
    %c0_i32_0 = arith.constant 0 : i32
    %c0_i32_1 = arith.constant 0 : i32
    return %c0_i32, %c0_i32_0 : i32, i32
  }
  func.func @transform_4(%arg0: i32) -> (i32, i32) {
    %c0_i32 = arith.constant 0 : i32
    %c0_i32_0 = arith.constant 0 : i32
    %c0_i32_1 = arith.constant 0 : i32
    return %c0_i32, %c0_i32_0 : i32, i32
  }
  func.func @transform_5(%arg0: i32) -> (i32, i32) {
    %c0_i32 = arith.constant 0 : i32
    %c0_i32_0 = arith.constant 0 : i32
    %c0_i32_1 = arith.constant 0 : i32
    return %c0_i32, %c0_i32_0 : i32, i32
  }
  func.func @transform_6(%arg0: i32) -> (i32, i32) {
    %c0_i32 = arith.constant 0 : i32
    %c0_i32_0 = arith.constant 0 : i32
    %c0_i32_1 = arith.constant 0 : i32
    return %c0_i32, %c0_i32_0 : i32, i32
  }
  func.func @transform_7(%arg0: i32) -> (i32, i32) {
    %c0_i32 = arith.constant 0 : i32
    %c0_i32_0 = arith.constant 0 : i32
    %c0_i32_1 = arith.constant 0 : i32
    return %c0_i32, %c0_i32_0 : i32, i32
  }
  func.func @transform_8(%arg0: i32) -> (i32, i32) {
    %c0_i32 = arith.constant 0 : i32
    %c0_i32_0 = arith.constant 0 : i32
    %c0_i32_1 = arith.constant 0 : i32
    return %c0_i32, %c0_i32_0 : i32, i32
  }
  func.func @transform_9(%arg0: i32) -> (i32, i32) {
    %c0_i32 = arith.constant 0 : i32
    %c0_i32_0 = arith.constant 0 : i32
    %c0_i32_1 = arith.constant 0 : i32
    return %c0_i32, %c0_i32_0 : i32, i32
  }
  func.func @transform_10(%arg0: i32) -> (i32, i32) {
    %c0_i32 = arith.constant 0 : i32
    %c0_i32_0 = arith.constant 0 : i32
    %c0_i32_1 = arith.constant 0 : i32
    return %c0_i32, %c0_i32_0 : i32, i32
  }
  func.func @transform_11(%arg0: i32) -> (i32, i32) {
    %c0_i32 = arith.constant 0 : i32
    %c0_i32_0 = arith.constant 0 : i32
    %c0_i32_1 = arith.constant 0 : i32
    return %c0_i32, %c0_i32_0 : i32, i32
  }
  func.func @transform_12(%arg0: i32) -> (i32, i32) {
    %c0_i32 = arith.constant 0 : i32
    %c0_i32_0 = arith.constant 0 : i32
    %c0_i32_1 = arith.constant 0 : i32
    return %c0_i32, %c0_i32_0 : i32, i32
  }
  func.func @transform_13(%arg0: i32) -> (i32, i32, i32) {
    %c0_i32 = arith.constant 0 : i32
    %c0_i32_0 = arith.constant 0 : i32
    %c0_i32_1 = arith.constant 0 : i32
    return %arg0, %c0_i32, %c0_i32_0 : i32, i32, i32
  }
}

</mosaic_0001>

<bundles_post_ra>
// kernel: tpu_custom_call.1
= control target key start
LH: loop header
LB: loop body
LE: loop exit
PB: predicated region body
PF: predicated region fallthrough
CT: control target
= control target key end

     0   :  { %18 = vsyncpa [#allocation3], 0  ;;  %s3223_s0 = inlined_call_operand.vmem [shape: f32[1,16,4], index: 0, kind: input, shape index: {}]   ;;  %s3224_s1 = inlined_call_operand.vmem [shape: f32[1,16,16], index: 1, kind: input, shape index: {}]   ;;  %s3225_s2 = inlined_call_operand.vmem [shape: f32[128,8], index: 2, kind: input, shape index: {}]   ;;  %s3226_s3 = inlined_call_operand.vmem [shape: f32[16,128], index: 3, kind: input, shape index: {}]   ;;  %s3227_s4 = inlined_call_operand.vmem [shape: f32[128,128], index: 4, kind: input, shape index: {}]   ;;  %s3228_s5 = inlined_call_operand.vmem [shape: bf16[4,1024], index: 5, kind: input, shape index: {}]   ;;  %s3229_s6 = inlined_call_operand.vmem [shape: f32[128,8], index: 6, kind: input, shape index: {}]   ;;  %s3230_s7 = inlined_call_operand.vmem [shape: f32[8,1024], index: 7, kind: input, shape index: {}]   ;;  %s3231_s8 = inlined_call_operand.vmem [shape: f32[8,128], index: 8, kind: input, shape index: {}]   ;;  %s3232_s9 = inlined_call_operand.hbm [shape: bf16[1024,128], index: 9, kind: input, shape index: {}]   ;;  %s3233_s10 = inlined_call_operand.vmem [shape: f32[128,1], index: 10, kind: input, shape index: {}]   ;;  %s3234_s11 = inlined_call_operand.vmem [shape: f32[1,128], index: 11, kind: input, shape index: {}]   ;;  %s3235_s12 = inlined_call_operand.vmem [shape: f32[1,128], index: 12, kind: input, shape index: {}]   ;;  %s3236_s13 = inlined_call_operand.hbm [shape: f32[1,16,128], index: 13, kind: output, shape index: {}]  }
   0x1   :  { %19 = vsyncpa [#allocation4], 0  ;;  %s42_s27 = sshll.u32 %s3232_s9, 4  ;;  %s2514_s28 = smov [#allocation2]   ;;  %s43_s27 = int_to_ptr.hbm [resolvable:$true] %s42_s27 }
   0x2   :  { %s44_s29 = sshll.u32 %s2514_s28, 4  ;;  %s2515_s30 = smov 64   ;;  %s45_s29 = int_to_ptr.vmem [resolvable:$true] %s44_s29 }
   0x3   :  { %s2516_s14 = smov 4  }
   0x4   :  { %50 = dma.hbm_to_vmem [thread:$0]  %s43_s27, 8192, %s45_s29, [#allocation3], %s2515_s30, %s2515_s30, %s2516_s14  }
   0x5   :  { %2510 = dma.done.wait [#allocation3], 8192  }
   0x6   :  { %2511 = vsyncadd [#allocation3], 4294959104  ;;  %v83_v0 = vld [vmem:[%s3228_s5] sm:$0xff]  ;;  %v84_v1 = vld [vmem:[%s3228_s5 + $0x8] sm:$0xff]  ;;  %vm102_vm0 = vcmask 1041408   ;;  %vm98_vm1 = vcmask 31744  }
   0x7   :  { %86 = vst [vmem:[#allocation1] ss:$4 sm:$0xff] %v83_v0  ;;  %v80_v2 = vld [vmem:[%s3223_s0] sm:$0xff]  ;;  %v81_v3 = vld [vmem:[%s3223_s0 + $0x8] sm:$0xff]  ;;  %v246_v18 = vld [vmem:[%s3229_s6 + $0x78] sm:$0xff]  ;;  %vm328_vm2 = vcmask 64512  }
   0x8   :  { %89 = vst [vmem:[#allocation1 + $0x20] ss:$4 sm:$0xff] %v84_v1  ;;  %v82_v8 = vpack.c.bf16 %v81_v3, %v80_v2  ;;  %v245_v22 = vld [vmem:[%s3229_s6 + $0x70] sm:$0xff]  ;;  %247 = vmatpush.msra.mxu0 %v246_v18  ;;  %v244_v23 = vld [vmem:[%s3229_s6 + $0x68] sm:$0xff]  ;;  %v243_v24 = vld [vmem:[%s3229_s6 + $0x60] sm:$0xff]  ;;  %vm738_vm4 = vcmask 130048  }
   0x9   :  { %v242_v25 = vld [vmem:[%s3229_s6 + $0x58] sm:$0xff]  ;;  %v241_v26 = vld [vmem:[%s3229_s6 + $0x50] sm:$0xff]  ;;  %v240_v27 = vld [vmem:[%s3229_s6 + $0x48] sm:$0xff]  ;;  %s1987_s0 = sshll.u32 %s3236_s13, 4  ;;  %s2519_s5 = smov 128   ;;  %s1988_s0 = int_to_ptr.hbm [resolvable:$true] %s1987_s0 }
   0xa   :  { %248 = vmatpush.msra.mxu0 %v245_v22  ;;  %v239_v28 = vld [vmem:[%s3229_s6 + $0x40] sm:$0xff]  ;;  %v238_v29 = vld [vmem:[%s3229_s6 + $0x38] sm:$0xff]  ;;  %v237_v30 = vld [vmem:[%s3229_s6 + $0x30] sm:$0xff] }
   0xb   :  { %v236_v31 = vld [vmem:[%s3229_s6 + $0x28] sm:$0xff]  ;;  %v235_v32 = vld [vmem:[%s3229_s6 + $0x20] sm:$0xff]  ;;  %v234_v33 = vld [vmem:[%s3229_s6 + $0x18] sm:$0xff] }
   0xc   :  { %249 = vmatpush.msra.mxu0 %v244_v23  ;;  %v233_v34 = vld [vmem:[%s3229_s6 + $0x10] sm:$0xff]  ;;  %v232_v35 = vld [vmem:[%s3229_s6 + $0x8] sm:$0xff]  ;;  %v231_v36 = vld [vmem:[%s3229_s6] sm:$0xff] }
   0xd   :  { %v378_v43 = vld [vmem:[%s3230_s7 + $0x8] sm:$0xff]  ;;  %v377_v44 = vld [vmem:[%s3230_s7] sm:$0xff]  ;;  %v380_v48 = vld [vmem:[%s3230_s7 + $0x18] sm:$0xff] }
   0xe   :  { %v90_v4 = vld.sshfl [vmem:[#allocation1] sm:$0xff pattern:$0x73625140]  ;;  %v93_v5 = vld.sshfl [vmem:[#allocation1 + $0x18] sm:$0xff pattern:$0x73625140]  ;;  %250 = vmatpush.msra.mxu0 %v243_v24 }
   0xf   :  { %v103_v6 = vsel %vm102_vm0, %v90_v4, 0  ;;  %v109_v7 = vsel %vm102_vm0, %v93_v5, 0  ;;  %v91_v9 = vld.sshfl [vmem:[#allocation1 + $0x8] sm:$0xff pattern:$0x73625140]  ;;  %v379_v52 = vld [vmem:[%s3230_s7 + $0x10] sm:$0xff] }
  0x10   :  { %126 = vmatpush.bf16.msra.mxu2 %v103_v6  ;;  %168 = vmatpush.bf16.msra.mxu3 %v109_v7  ;;  %v105_v10 = vsel %vm102_vm0, %v91_v9, 0  ;;  %v94_v11 = vld.sshfl [vmem:[#allocation1 + $0x20] sm:$0xff pattern:$0x73625140]  ;;  %v382_v56 = vld [vmem:[%s3230_s7 + $0x28] sm:$0xff]  ;;  %v383_v61 = vld [vmem:[%s3230_s7 + $0x30] sm:$0xff] }
  0x11   :  { %140 = vmatpush.bf16.msra.mxu1 %v105_v10  ;;  %v111_v12 = vsel %vm102_vm0, %v94_v11, 0  ;;  %v92_v13 = vld.sshfl [vmem:[#allocation1 + $0x10] sm:$0xff pattern:$0x73625140]  ;;  %251 = vmatpush.msra.mxu0 %v242_v25  ;;  %v381_v53 = vld [vmem:[%s3230_s7 + $0x20] sm:$0xff]  ;;  %v384_v62 = vld [vmem:[%s3230_s7 + $0x38] sm:$0xff] }
  0x12   :  { %v107_v14 = vsel %vm102_vm0, %v92_v13, 0  ;;  %v95_v15 = vld.sshfl [vmem:[#allocation1 + $0x28] sm:$0xff pattern:$0x73625140]  ;;  %v2722_v5 = vld [vmem:[%s3225_s2] sm:$0xff]  ;;  %v2736_v13 = vld [vmem:[%s3225_s2 + $0x10] sm:$0xff] }
  0x13   :  { %2000 = vmatmul.msk.bf16.vlgmr.msra.gmra.mxu2 %vm98_vm1, %v82_v8  ;;  %2003 = vmatmul.msk.bf16.vlgmr.msra.gmra.mxu3 %vm98_vm1, %v82_v8  ;;  %v113_v16 = vsel %vm102_vm0, %v95_v15, 0  ;;  %v97_v17 = vld.sshfl [vmem:[#allocation1 + $0x38] sm:$0xff pattern:$0x73625140]  ;;  %v2729_v9 = vld [vmem:[%s3225_s2 + $0x8] sm:$0xff]  ;;  %v2750_v22 = vld [vmem:[%s3225_s2 + $0x20] sm:$0xff] }
  0x14   :  { %182 = vmatpush.bf16.msrb.mxu3 %v111_v12  ;;  %2001 = vmatmul.msk.bf16.vlgmr.msra.gmra.mxu1 %vm98_vm1, %v82_v8  ;;  %v117_v19 = vsel %vm102_vm0, %v97_v17, 0  ;;  %v96_v20 = vld.sshfl [vmem:[#allocation1 + $0x30] sm:$0xff pattern:$0x73625140]  ;;  %v2743_v17 = vld [vmem:[%s3225_s2 + $0x18] sm:$0xff] }
  0x15   :  { %154 = vmatpush.bf16.msrb.mxu2 %v107_v14  ;;  %196 = vmatpush.bf16.msrb.mxu1 %v113_v16  ;;  %v115_v21 = vsel %vm102_vm0, %v96_v20, 0 }
  0x16   :  { %252 = vmatpush.msra.mxu0 %v241_v26 }
  0x18   :  { %224 = vmatpush.bf16.msra.mxu3 %v117_v19  ;;  %253 = vmatpush.msra.mxu0 %v240_v27 }
  0x19   :  { %210 = vmatpush.bf16.msra.mxu2 %v115_v21 }
  0x1a   :  { %254 = vmatpush.msra.mxu0 %v239_v28 }
  0x1c   :  { %255 = vmatpush.msra.mxu0 %v238_v29  ;;  %v2757_v29 = vld [vmem:[%s3225_s2 + $0x28] sm:$0xff] }
  0x1e   :  { %256 = vmatpush.msra.mxu0 %v237_v30 }
  0x20   :  { %257 = vmatpush.msra.mxu0 %v236_v31 }
  0x22   :  { %258 = vmatpush.msra.mxu0 %v235_v32 }
  0x23   :  { %2002 = vmatmul.msk.bf16.vlgmr.msrb.gmra.mxu2 %vm98_vm1, %v82_v8  ;;  %2004 = vmatmul.msk.bf16.vlgmr.msrb.gmra.mxu3 %vm98_vm1, %v82_v8 }
  0x24   :  { %2005 = vmatmul.msk.bf16.vlgmr.msrb.gmra.mxu1 %vm98_vm1, %v82_v8  ;;  %259 = vmatpush.msra.mxu0 %v234_v33 }
  0x26   :  { %260 = vmatpush.msra.mxu0 %v233_v34 }
  0x28   :  { %261 = vmatpush.msra.mxu0 %v232_v35 }
  0x2a   :  { %262 = vmatpush.msra.mxu0 %v231_v36 }
  0x33   :  { %2006 = vmatmul.msk.bf16.vlgmr.msra.gmra.mxu2 %vm98_vm1, %v82_v8  ;;  %2007 = vmatmul.msk.bf16.vlgmr.msra.gmra.mxu3 %vm98_vm1, %v82_v8 }
  0x91   :  { %v2670_v37 = vpop.f32.mrf.mxu1 }
  0x96   :  { %v2672_v38 = vpop.f32.mrf.mxu2  ;;  %v2674_v39 = vpop.f32.mrf.mxu3 }
  0x97   :  { %263 = vmatmul.f32.vlgmr.msra.gmra.mxu0 %v2672_v38 }
  0x99   :  { %v2677_v40 = vpop.f32.mrf.mxu1 }
  0x9a   :  { %419 = vmatpush.xpose.msrb.mxu2 %v2677_v40  ;;  %v1071_v3 = vpack.c.bf16 %v2677_v40, %v2670_v37 }
  0x9e   :  { %v2680_v41 = vpop.f32.mrf.mxu2  ;;  %v172_v42 = vpop.f32.mrf.mxu3  ;;  %420 = vmatpush.xpose.msrb.mxu2 %v2670_v37 }
  0x9f   :  { %266 = vmatmul.f32.gmra.mxu0 %v2680_v41  ;;  %399 = vmatpush.xpose.msra.mxu1 %v2680_v41  ;;  %v1073_v1 = vpack.c.bf16 %v172_v42, %v2674_v39  ;;  %v1070_v4 = vpack.c.bf16 %v2680_v41, %v2672_v38 }
  0xa1   :  { %421 = vmatmul.f32.vlgmr.msrb.gmra.mxu2 %v378_v43  ;;  %v198_v47 = vpop.f32.mrf.mxu1 }
  0xa3   :  { %400 = vmatpush.xpose.msra.mxu1 %v2672_v38  ;;  %v2764_v38 = vld [vmem:[%s3225_s2 + $0x30] sm:$0xff] }
  0xa6   :  { %v156_v45 = vpop.f32.mrf.mxu2  ;;  %v184_v46 = vpop.f32.mrf.mxu3  ;;  %401 = vmatmul.f32.vlgmr.msra.gmra.mxu1 %v377_v44 }
  0xa7   :  { %459 = vmatpush.xpose.msrb.mxu1 %v172_v42  ;;  %269 = vmatmul.f32.gmra.mxu0 %v2670_v37 }
  0xa9   :  { %v200_v51 = vpop.f32.mrf.mxu1 }
  0xaa   :  { %v1075_v63 = vpack.c.bf16 %v200_v51, %v198_v47 }
  0xab   :  { %460 = vmatpush.xpose.msrb.mxu1 %v2674_v39 }
  0xae   :  { %v158_v49 = vpop.f32.mrf.mxu2  ;;  %v186_v50 = vpop.f32.mrf.mxu3  ;;  %461 = vmatmul.f32.vlgmr.msrb.gmra.mxu1 %v380_v48 }
  0xaf   :  { %272 = vmatmul.f32.gmra.mxu0 %v2677_v40  ;;  %439 = vmatpush.xpose.msrb.mxu3 %v158_v49  ;;  %v1074_v0 = vpack.c.bf16 %v186_v50, %v184_v46  ;;  %v1072_v2 = vpack.c.bf16 %v158_v49, %v156_v45 }
  0xb0   :  { %479 = vmatpush.xpose.msra.mxu2 %v186_v50 }
  0xb3   :  { %440 = vmatpush.xpose.msrb.mxu3 %v156_v45 }
  0xb4   :  { %480 = vmatpush.xpose.msra.mxu2 %v184_v46 }
  0xb6   :  { %v212_v54 = vpop.f32.mrf.mxu2  ;;  %v226_v55 = vpop.f32.mrf.mxu3  ;;  %441 = vmatmul.f32.vlgmr.msrb.gmra.mxu3 %v379_v52  ;;  %v2794_v52 = vld [vmem:[%s3225_s2 + $0x40] sm:$0xff] }
  0xb7   :  { %499 = vmatpush.xpose.msra.mxu3 %v200_v51  ;;  %275 = vmatmul.f32.gmra.mxu0 %v156_v45 }
  0xb8   :  { %481 = vmatmul.f32.vlgmr.msra.gmra.mxu2 %v381_v53  ;;  %v2801_v53 = vld [vmem:[%s3225_s2 + $0x48] sm:$0xff] }
  0xbb   :  { %500 = vmatpush.xpose.msra.mxu3 %v198_v47 }
  0xbe   :  { %v214_v57 = vpop.f32.mrf.mxu2  ;;  %v228_v58 = vpop.f32.mrf.mxu3  ;;  %501 = vmatmul.f32.vlgmr.msra.gmra.mxu3 %v382_v56  ;;  %v2822_v56 = vld [vmem:[%s3225_s2 + $0x60] sm:$0xff] }
  0xbf   :  { %278 = vmatmul.f32.gmra.mxu0 %v158_v49  ;;  %519 = vmatpush.xpose.msra.mxu1 %v214_v57  ;;  %v1077_v59 = vpack.c.bf16 %v228_v58, %v226_v55  ;;  %v1076_v60 = vpack.c.bf16 %v214_v57, %v212_v54 }
  0xc0   :  { %539 = vmatpush.xpose.msrb.mxu2 %v228_v58 }
  0xc1   :  { %1144 = vmatpush.bf16.msrb.mxu0 %v1077_v59  ;;  %v2843_v59 = vld [vmem:[%s3225_s2 + $0x78] sm:$0xff] }
  0xc3   :  { %520 = vmatpush.xpose.msra.mxu1 %v212_v54 }
  0xc4   :  { %540 = vmatpush.xpose.msrb.mxu2 %v226_v55 }
  0xc5   :  { %1145 = vmatpush.bf16.msrb.mxu0 %v1076_v60 }
  0xc6   :  { %521 = vmatmul.f32.vlgmr.msra.gmra.mxu1 %v383_v61 }
  0xc7   :  { %541 = vmatmul.f32.vlgmr.msrb.gmra.mxu2 %v384_v62  ;;  %281 = vmatmul.f32.gmra.mxu0 %v2674_v39 }
  0xc9   :  { %1146 = vmatpush.bf16.msrb.mxu0 %v1075_v63 }
  0xcd   :  { %1147 = vmatpush.bf16.msrb.mxu0 %v1074_v0 }
  0xcf   :  { %284 = vmatmul.f32.gmra.mxu0 %v172_v42 }
  0xd1   :  { %1148 = vmatpush.bf16.msrb.mxu0 %v1073_v1  ;;  %v2850_v1 = vld [vmem:[%s3224_s1] sm:$0xff] }
  0xd5   :  { %1149 = vmatpush.bf16.msrb.mxu0 %v1072_v2 }
  0xd7   :  { %287 = vmatmul.f32.gmra.mxu0 %v184_v46 }
  0xd9   :  { %1150 = vmatpush.bf16.msrb.mxu0 %v1071_v3 }
  0xdd   :  { %1151 = vmatpush.bf16.msrb.mxu0 %v1070_v4 }
  0xdf   :  { %290 = vmatmul.f32.gmra.mxu0 %v186_v50 }
  0xe7   :  { %293 = vmatmul.f32.gmra.mxu0 %v198_v47  ;;  %v2771_v47 = vld [vmem:[%s3225_s2 + $0x38] sm:$0xff] }
  0xef   :  { %296 = vmatmul.f32.gmra.mxu0 %v200_v51 }
  0xf7   :  { %299 = vmatmul.f32.gmra.mxu0 %v212_v54  ;;  %v2808_v54 = vld [vmem:[%s3225_s2 + $0x50] sm:$0xff] }
  0xff   :  { %302 = vmatmul.f32.gmra.mxu0 %v214_v57  ;;  %v2829_v57 = vld [vmem:[%s3225_s2 + $0x68] sm:$0xff] }
 0x107   :  { %305 = vmatmul.f32.gmra.mxu0 %v226_v55  ;;  %v2815_v55 = vld [vmem:[%s3225_s2 + $0x58] sm:$0xff] }
 0x10f   :  { %308 = vmatmul.f32.gmra.mxu0 %v228_v58  ;;  %v2836_v58 = vld [vmem:[%s3225_s2 + $0x70] sm:$0xff]  ;;  %s2518_s2 = smov [#allocation5]  }
 0x110   :  { %s1985_s19 = sshll.u32 %s2518_s2, 4  ;;  %s1986_s19 = int_to_ptr.vmem [resolvable:$true] %s1985_s19 }
 0x114   :  { %v264_v6 = vpop.f32.mrf.mxu0 }
 0x115   :  { %v312_v7 = vmul.f32 %v264_v6, %v2722_v5 }
 0x117   :  { %v329_v8 = vsel %vm328_vm2, %v312_v7, 0.0 }
 0x118   :  { %330 = vadd.xlane.f32.xlu0 %v329_v8 }
 0x11c   :  { %v267_v10 = vpop.f32.mrf.mxu0 }
 0x11d   :  { %v313_v11 = vmul.f32 %v267_v10, %v2729_v9 }
 0x11f   :  { %v332_v12 = vsel %vm328_vm2, %v313_v11, 0.0 }
 0x120   :  { %333 = vadd.xlane.f32.xlu0 %v332_v12  ;;  %v2860_v12 = vld [vmem:[%s3224_s1 + $0x8] sm:$0xff] }
 0x123   :  { %v402_v21 = vpop.f32.mrf.mxu1 }
 0x124   :  { %v270_v14 = vpop.f32.mrf.mxu0  ;;  %v422_v25 = vpop.f32.mrf.mxu2 }
 0x125   :  { %v314_v15 = vmul.f32 %v270_v14, %v2736_v13  ;;  %v423_v26 = vadd.f32 %v422_v25, %v402_v21 }
 0x127   :  { %v335_v16 = vsel %vm328_vm2, %v314_v15, 0.0 }
 0x128   :  { %336 = vadd.xlane.f32.xlu1 %v335_v16 }
 0x12b   :  { %v462_v31 = vpop.f32.mrf.mxu1 }
 0x12c   :  { %v273_v18 = vpop.f32.mrf.mxu0 }
 0x12d   :  { %v315_v19 = vmul.f32 %v273_v18, %v2743_v17 }
 0x12f   :  { %v338_v20 = vsel %vm328_vm2, %v315_v19, 0.0 }
 0x130   :  { %339 = vadd.xlane.f32.xlu1 %v338_v20 }
 0x134   :  { %v276_v23 = vpop.f32.mrf.mxu0 }
 0x135   :  { %v316_v24 = vmul.f32 %v276_v23, %v2750_v22 }
 0x137   :  { %v341_v27 = vsel %vm328_vm2, %v316_v24, 0.0 }
 0x138   :  { %342 = vadd.xlane.f32.xlu2 %v341_v27 }
 0x139   :  { %v442_v28 = vpop.f32.mrf.mxu3 }
 0x13a   :  { %v443_v30 = vadd.f32 %v442_v28, %v423_v26 }
 0x13b   :  { %v482_v36 = vpop.f32.mrf.mxu2 }
 0x13c   :  { %v279_v32 = vpop.f32.mrf.mxu0  ;;  %v463_v34 = vadd.f32 %v462_v31, %v443_v30 }
 0x13d   :  { %v317_v33 = vmul.f32 %v279_v32, %v2757_v29 }
 0x13e   :  { %v483_v39 = vadd.f32 %v482_v36, %v463_v34 }
 0x13f   :  { %v344_v35 = vsel %vm328_vm2, %v317_v33, 0.0 }
 0x140   :  { %345 = vadd.xlane.f32.xlu2 %v344_v35 }
 0x141   :  { %v502_v37 = vpop.f32.mrf.mxu3 }
 0x142   :  { %v503_v41 = vadd.f32 %v502_v37, %v483_v39 }
 0x143   :  { %v522_v43 = vpop.f32.mrf.mxu1 }
 0x144   :  { %v282_v40 = vpop.f32.mrf.mxu0  ;;  %v523_v45 = vadd.f32 %v522_v43, %v503_v41 }
 0x145   :  { %v318_v42 = vmul.f32 %v282_v40, %v2764_v38 }
 0x147   :  { %v347_v44 = vsel %vm328_vm2, %v318_v42, 0.0 }
 0x148   :  { %348 = vadd.xlane.f32.xlu0 %v347_v44 }
 0x14a   :  { %v542_v46 = vpop.f32.mrf.mxu2 }
 0x14b   :  { %v543_v48 = vadd.f32 %v542_v46, %v523_v45 }
 0x14c   :  { %v285_v49 = vpop.f32.mrf.mxu0 }
 0x14d   :  { %v319_v50 = vmul.f32 %v285_v49, %v2771_v47  ;;  %608 = vmatpush.msrb.mxu3 %v543_v48 }
 0x14e   :  { %2008 = vmatmul.msk.f32.vlgmr.msrb.gmra.mxu3 %vm328_vm2, %v2722_v5 }
 0x14f   :  { %v350_v51 = vsel %vm328_vm2, %v319_v50, 0.0 }
 0x150   :  { %351 = vadd.xlane.f32.xlu2 %v350_v51 }
 0x154   :  { %v288_v60 = vpop.f32.mrf.mxu0 }
 0x155   :  { %v320_v14 = vmul.f32 %v288_v60, %v2794_v52 }
 0x156   :  { %2009 = vmatmul.msk.f32.gmra.mxu3 %vm328_vm2, %v2729_v9 }
 0x157   :  { %v353_v23 = vsel %vm328_vm2, %v320_v14, 0.0 }
 0x15c   :  { %v291_v2 = vpop.f32.mrf.mxu0 }
 0x15d   :  { %v321_v26 = vmul.f32 %v291_v2, %v2801_v53 }
 0x15e   :  { %2010 = vmatmul.msk.f32.gmra.mxu3 %vm328_vm2, %v2736_v13 }
 0x15f   :  { %v356_v32 = vsel %vm328_vm2, %v321_v26, 0.0 }
 0x164   :  { %v294_v19 = vpop.f32.mrf.mxu0 }
 0x165   :  { %v322_v37 = vmul.f32 %v294_v19, %v2808_v54 }
 0x166   :  { %2011 = vmatmul.msk.f32.gmra.mxu3 %vm328_vm2, %v2743_v17 }
 0x167   :  { %v359_v43 = vsel %vm328_vm2, %v322_v37, 0.0 }
 0x16c   :  { %v297_v34 = vpop.f32.mrf.mxu0 }
 0x16d   :  { %v323_v49 = vmul.f32 %v297_v34, %v2815_v55 }
 0x16e   :  { %2012 = vmatmul.msk.f32.gmra.mxu3 %vm328_vm2, %v2750_v22 }
 0x174   :  { %v300_v46 = vpop.f32.mrf.mxu0 }
 0x176   :  { %2013 = vmatmul.msk.f32.gmra.mxu3 %vm328_vm2, %v2757_v29 }
 0x17e   :  { %2014 = vmatmul.msk.f32.gmra.mxu3 %vm328_vm2, %v2764_v38 }
 0x186   :  { %2015 = vmatmul.msk.f32.gmra.mxu3 %vm328_vm2, %v2771_v47 }
 0x18b   :  { %v331_v61 = vpop.xlane.xlu0 %330 }
 0x18e   :  { %2016 = vmatmul.msk.f32.gmra.mxu3 %vm328_vm2, %v2794_v52 }
 0x193   :  { %v334_v6 = vpop.xlane.xlu0 %333 }
 0x196   :  { %2017 = vmatmul.msk.f32.gmra.mxu3 %vm328_vm2, %v2801_v53 }
 0x19b   :  { %v337_v16 = vpop.xlane.xlu1 %336 }
 0x19e   :  { %2018 = vmatmul.msk.f32.gmra.mxu3 %vm328_vm2, %v2808_v54 }
 0x1a3   :  { %v340_v30 = vpop.xlane.xlu1 %339 }
 0x1a6   :  { %2019 = vmatmul.msk.f32.gmra.mxu3 %vm328_vm2, %v2815_v55 }
 0x1ab   :  { %v343_v40 = vpop.xlane.xlu2 %342 }
 0x1ae   :  { %2020 = vmatmul.msk.f32.gmra.mxu3 %vm328_vm2, %v2822_v56 }
 0x1b3   :  { %v346_v60 = vpop.xlane.xlu2 %345 }
 0x1b6   :  { %2021 = vmatmul.msk.f32.gmra.mxu3 %vm328_vm2, %v2829_v57 }
 0x1be   :  { %2022 = vmatmul.msk.f32.gmra.mxu3 %vm328_vm2, %v2836_v58 }
 0x1c6   :  { %2023 = vmatmul.msk.f32.gmra.mxu3 %vm328_vm2, %v2843_v59 }
 0x1d1   :  { %v610_v62 = vpop.f32.mrf.mxu3 }
 0x1d2   :  { %v658_v63 = vadd.f32 %v610_v62, %v331_v61 }
 0x1d4   :  { %vm674_vm3 = vcmp.gt.f32.partialorder %v658_v63, 0.0  ;;  %v690_v0 = vmul.f32 0.2, %v658_v63 }
 0x1d6   :  { %v706_v3 = vsel %vm674_vm3, %v658_v63, %v690_v0  ;;  %v362_v63 = vsel %vm328_vm2, %v323_v49, 0.0 }
 0x1d7   :  { %v2853_v4 = vadd.f32 %v706_v3, %v2850_v1  ;;  %v324_v3 = vmul.f32 %v300_v46, %v2822_v56 }
 0x1d9   :  { %v613_v7 = vpop.f32.mrf.mxu3  ;;  %v739_v8 = vsel %vm738_vm4, %v2853_v4, -inf  ;;  %v365_v14 = vsel %vm328_vm2, %v324_v3, 0.0 }
 0x1da   :  { %v659_v10 = vadd.f32 %v613_v7, %v334_v6  ;;  %740 = vmax.xlane.f32.xlu1 %v739_v8  ;;  %v303_v6 = vpop.f32.mrf.mxu0 }
 0x1dc   :  { %vm675_vm5 = vcmp.gt.f32.partialorder %v659_v10, 0.0  ;;  %v691_v11 = vmul.f32 0.2, %v659_v10 }
 0x1de   :  { %v707_v15 = vsel %vm675_vm5, %v659_v10, %v691_v11  ;;  %v349_v10 = vpop.xlane.xlu0 %348 }
 0x1df   :  { %v2864_v18 = vadd.f32 %v707_v15, %v2860_v12 }
 0x1e1   :  { %v616_v20 = vpop.f32.mrf.mxu3  ;;  %v742_v21 = vsel %vm738_vm4, %v2864_v18, -inf }
 0x1e2   :  { %v660_v24 = vadd.f32 %v616_v20, %v337_v16  ;;  %743 = vmax.xlane.f32.xlu0 %v742_v21  ;;  %354 = vadd.xlane.f32.xlu1 %v353_v23  ;;  %v325_v20 = vmul.f32 %v303_v6, %v2829_v57 }
 0x1e4   :  { %vm676_vm6 = vcmp.gt.f32.partialorder %v660_v24, 0.0  ;;  %v692_v25 = vmul.f32 0.2, %v660_v24 }
 0x1e6   :  { %v708_v27 = vsel %vm676_vm6, %v660_v24, %v692_v25  ;;  %v306_v24 = vpop.f32.mrf.mxu0  ;;  %v352_v25 = vpop.xlane.xlu2 %351 }
 0x1e7   :  { %v2871_v28 = vadd.f32 %v708_v27, %v2850_v1  ;;  %v368_v27 = vsel %vm328_vm2, %v325_v20, 0.0 }
 0x1e9   :  { %v619_v31 = vpop.f32.mrf.mxu3  ;;  %v745_v33 = vsel %vm738_vm4, %v2871_v28, -inf }
 0x1ea   :  { %v661_v35 = vadd.f32 %v619_v31, %v340_v30  ;;  %357 = vadd.xlane.f32.xlu0 %v356_v32  ;;  %746 = vmax.xlane.f32.xlu2 %v745_v33  ;;  %v326_v33 = vmul.f32 %v306_v24, %v2836_v58 }
 0x1ec   :  { %vm677_vm7 = vcmp.gt.f32.partialorder %v661_v35, 0.0  ;;  %v693_v36 = vmul.f32 0.2, %v661_v35 }
 0x1ee   :  { %v709_v39 = vsel %vm677_vm7, %v661_v35, %v693_v36  ;;  %v371_v36 = vsel %vm328_vm2, %v326_v33, 0.0 }
 0x1ef   :  { %v2878_v41 = vadd.f32 %v709_v39, %v2860_v12  ;;  %v309_v39 = vpop.f32.mrf.mxu0 }
 0x1f1   :  { %v622_v42 = vpop.f32.mrf.mxu3  ;;  %v748_v44 = vsel %vm738_vm4, %v2878_v41, -inf }
 0x1f2   :  { %v662_v45 = vadd.f32 %v622_v42, %v343_v40  ;;  %360 = vadd.xlane.f32.xlu2 %v359_v43  ;;  %749 = vmax.xlane.f32.xlu1 %v748_v44  ;;  %v327_v40 = vmul.f32 %v309_v39, %v2843_v59 }
 0x1f4   :  { %vm678_vm8 = vcmp.gt.f32.partialorder %v662_v45, 0.0  ;;  %v694_v48 = vmul.f32 0.2, %v662_v45  ;;  %v374_v42 = vsel %vm328_vm2, %v327_v40, 0.0 }
 0x1f6   :  { %v710_v50 = vsel %vm678_vm8, %v662_v45, %v694_v48 }
 0x1f7   :  { %v2885_v51 = vadd.f32 %v710_v50, %v2850_v1 }
 0x1f9   :  { %v625_v61 = vpop.f32.mrf.mxu3  ;;  %v751_v62 = vsel %vm738_vm4, %v2885_v51, -inf }
 0x1fa   :  { %v663_v0 = vadd.f32 %v625_v61, %v346_v60  ;;  %752 = vmax.xlane.f32.xlu0 %v751_v62  ;;  %363 = vadd.xlane.f32.xlu1 %v362_v63 }
 0x1fc   :  { %vm679_vm9 = vcmp.gt.f32.partialorder %v663_v0, 0.0  ;;  %v695_v2 = vmul.f32 0.2, %v663_v0 }
 0x1fe   :  { %v711_v7 = vsel %vm679_vm9, %v663_v0, %v695_v2 }
 0x1ff   :  { %v2892_v8 = vadd.f32 %v711_v7, %v2860_v12 }
 0x201   :  { %v628_v11 = vpop.f32.mrf.mxu3  ;;  %v754_v15 = vsel %vm738_vm4, %v2892_v8, -inf }
 0x202   :  { %v664_v16 = vadd.f32 %v628_v11, %v349_v10  ;;  %366 = vadd.xlane.f32.xlu0 %v365_v14  ;;  %755 = vmax.xlane.f32.xlu2 %v754_v15 }
 0x204   :  { %vm680_vm10 = vcmp.gt.f32.partialorder %v664_v16, 0.0  ;;  %v696_v19 = vmul.f32 0.2, %v664_v16 }
 0x206   :  { %v712_v21 = vsel %vm680_vm10, %v664_v16, %v696_v19 }
 0x207   :  { %v2899_v23 = vadd.f32 %v712_v21, %v2850_v1 }
 0x209   :  { %v631_v26 = vpop.f32.mrf.mxu3  ;;  %v757_v30 = vsel %vm738_vm4, %v2899_v23, -inf }
 0x20a   :  { %v665_v31 = vadd.f32 %v631_v26, %v352_v25  ;;  %369 = vadd.xlane.f32.xlu0 %v368_v27  ;;  %758 = vmax.xlane.f32.xlu1 %v757_v30 }
 0x20c   :  { %vm681_vm11 = vcmp.gt.f32.partialorder %v665_v31, 0.0  ;;  %v697_v32 = vmul.f32 0.2, %v665_v31 }
 0x20e   :  { %v713_v34 = vsel %vm681_vm11, %v665_v31, %v697_v32 }
 0x20f   :  { %v2906_v35 = vadd.f32 %v713_v34, %v2860_v12 }
 0x211   :  { %v760_v37 = vsel %vm738_vm4, %v2906_v35, -inf  ;;  %v634_v43 = vpop.f32.mrf.mxu3 }
 0x212   :  { %372 = vadd.xlane.f32.xlu0 %v371_v36  ;;  %761 = vmax.xlane.f32.xlu1 %v760_v37 }
 0x219   :  { %v637_v46 = vpop.f32.mrf.mxu3 }
 0x21a   :  { %375 = vadd.xlane.f32.xlu0 %v374_v42 }
 0x221   :  { %v640_v2 = vpop.f32.mrf.mxu3 }
 0x229   :  { %v643_v24 = vpop.f32.mrf.mxu3 }
 0x231   :  { %v646_v40 = vpop.f32.mrf.mxu3 }
 0x24d   :  { %v741_v44 = vpop.xlane.xlu1 %740 }
 0x24e   :  { %v787_v45 = vsub.f32 %v2853_v4, %v741_v44 }
 0x250   :  { %v803_v48 = vmul.f32 1.442695, %v787_v45 }
 0x252   :  { %2388 = vpow2.f32 %v803_v48 }
 0x255   :  { %v744_v49 = vpop.xlane.xlu0 %743  ;;  %v355_v50 = vpop.xlane.xlu1 %354 }
 0x256   :  { %v788_v60 = vsub.f32 %v2864_v18, %v744_v49  ;;  %v666_v61 = vadd.f32 %v634_v43, %v355_v50 }
 0x258   :  { %v2915_v62 = vpop.eup %2388  ;;  %v805_v63 = vmul.f32 1.442695, %v788_v60  ;;  %vm682_vm12 = vcmp.gt.f32.partialorder %v666_v61, 0.0  ;;  %v698_v0 = vmul.f32 0.2, %v666_v61 }
 0x259   :  { %v835_v3 = vsel %vm738_vm4, %v2915_v62, 0.0 }
 0x25a   :  { %2390 = vpow2.f32 %v805_v63  ;;  %836 = vadd.xlane.f32.xlu2 %v835_v3  ;;  %v714_v4 = vsel %vm682_vm12, %v666_v61, %v698_v0  ;;  %v649_v3 = vpop.f32.mrf.mxu3 }
 0x25b   :  { %v2920_v6 = vadd.f32 %v714_v4, %v2850_v1 }
 0x25d   :  { %v358_v7 = vpop.xlane.xlu0 %357  ;;  %v747_v10 = vpop.xlane.xlu2 %746  ;;  %v763_v18 = vsel %vm738_vm4, %v2920_v6, -inf }
 0x25e   :  { %v667_v11 = vadd.f32 %v637_v46, %v358_v7  ;;  %v789_v14 = vsub.f32 %v2871_v28, %v747_v10  ;;  %764 = vmax.xlane.f32.xlu1 %v763_v18 }
 0x260   :  { %v2925_v15 = vpop.eup %2390  ;;  %vm683_vm13 = vcmp.gt.f32.partialorder %v667_v11, 0.0  ;;  %v699_v16 = vmul.f32 0.2, %v667_v11  ;;  %v807_v19 = vmul.f32 1.442695, %v789_v14 }
 0x261   :  { %v838_v20 = vsel %vm738_vm4, %v2925_v15, 0.0 }
 0x262   :  { %2392 = vpow2.f32 %v807_v19  ;;  %839 = vadd.xlane.f32.xlu2 %v838_v20  ;;  %v715_v21 = vsel %vm683_vm13, %v667_v11, %v699_v16 }
 0x263   :  { %v2930_v25 = vadd.f32 %v715_v21, %v2860_v12 }
 0x265   :  { %v361_v26 = vpop.xlane.xlu2 %360  ;;  %v750_v27 = vpop.xlane.xlu1 %749  ;;  %v766_v28 = vsel %vm738_vm4, %v2930_v25, -inf }
 0x266   :  { %v668_v30 = vadd.f32 %v640_v2, %v361_v26  ;;  %v790_v31 = vsub.f32 %v2878_v41, %v750_v27  ;;  %767 = vmax.xlane.f32.xlu1 %v766_v28 }
 0x268   :  { %v2935_v32 = vpop.eup %2392  ;;  %vm684_vm14 = vcmp.gt.f32.partialorder %v668_v30, 0.0  ;;  %v700_v33 = vmul.f32 0.2, %v668_v30  ;;  %v809_v34 = vmul.f32 1.442695, %v790_v31  ;;  %v652_v31 = vpop.f32.mrf.mxu3 }
 0x269   :  { %v841_v36 = vsel %vm738_vm4, %v2935_v32, 0.0 }
 0x26a   :  { %2394 = vpow2.f32 %v809_v34  ;;  %842 = vadd.xlane.f32.xlu2 %v841_v36  ;;  %v716_v37 = vsel %vm684_vm14, %v668_v30, %v700_v33 }
 0x26b   :  { %v2940_v39 = vadd.f32 %v716_v37, %v2850_v1 }
 0x26d   :  { %v753_v42 = vpop.xlane.xlu0 %752  ;;  %v364_v43 = vpop.xlane.xlu1 %363  ;;  %v769_v41 = vsel %vm738_vm4, %v2940_v39, -inf }
 0x26e   :  { %v791_v44 = vsub.f32 %v2885_v51, %v753_v42  ;;  %v669_v45 = vadd.f32 %v643_v24, %v364_v43  ;;  %770 = vmax.xlane.f32.xlu0 %v769_v41 }
 0x270   :  { %v2945_v46 = vpop.eup %2394  ;;  %v811_v48 = vmul.f32 1.442695, %v791_v44  ;;  %vm685_vm15 = vcmp.gt.f32.partialorder %v669_v45, 0.0  ;;  %v701_v49 = vmul.f32 0.2, %v669_v45 }
 0x271   :  { %v844_v50 = vsel %vm738_vm4, %v2945_v46, 0.0 }
 0x272   :  { %2396 = vpow2.f32 %v811_v48  ;;  %845 = vadd.xlane.f32.xlu2 %v844_v50  ;;  %v717_v60 = vsel %vm685_vm15, %v669_v45, %v701_v49  ;;  %v655_v49 = vpop.f32.mrf.mxu3 }
 0x273   :  { %v2950_v0 = vadd.f32 %v717_v60, %v2860_v12 }
 0x275   :  { %v367_v61 = vpop.xlane.xlu0 %366  ;;  %v756_v63 = vpop.xlane.xlu2 %755  ;;  %v772_v11 = vsel %vm738_vm4, %v2950_v0, -inf }
 0x276   :  { %v670_v2 = vadd.f32 %v646_v40, %v367_v61  ;;  %v792_v51 = vsub.f32 %v2892_v8, %v756_v63 }
 0x278   :  { %v2953_v4 = vpop.eup %2396  ;;  %vm686_vm0 = vcmp.gt.f32.partialorder %v670_v2, 0.0  ;;  %v702_v7 = vmul.f32 0.2, %v670_v2  ;;  %v813_v10 = vmul.f32 1.442695, %v792_v51 }
 0x279   :  { %v847_v18 = vsel %vm738_vm4, %v2953_v4, 0.0 }
 0x27a   :  { %2398 = vpow2.f32 %v813_v10  ;;  %848 = vadd.xlane.f32.xlu1 %v847_v18  ;;  %773 = vmax.xlane.f32.xlu2 %v772_v11  ;;  %v718_v14 = vsel %vm686_vm0, %v670_v2, %v702_v7  ;;  %v916_v10 = vld [vmem:[%s3226_s3 + $0x8] sm:$0xff]  ;;  %v915_v18 = vld [vmem:[%s3226_s3] sm:$0xff]  ;;  %s2520_s3 = smov 8  }
 0x27b   :  { %v2960_v8 = vadd.f32 %v718_v14, %v2850_v1  ;;  %979 = vmatpush.msrb.mxu1 %v916_v10 }
 0x27d   :  { %v370_v16 = vpop.xlane.xlu0 %369  ;;  %v759_v19 = vpop.xlane.xlu1 %758  ;;  %v775_v30 = vsel %vm738_vm4, %v2960_v8, -inf  ;;  %980 = vmatpush.msrb.mxu1 %v915_v18 }
 0x27e   :  { %v671_v20 = vadd.f32 %v649_v3, %v370_v16  ;;  %v793_v21 = vsub.f32 %v2899_v23, %v759_v19 }
 0x280   :  { %v2963_v24 = vpop.eup %2398  ;;  %vm687_vm1 = vcmp.gt.f32.partialorder %v671_v20, 0.0  ;;  %v703_v26 = vmul.f32 0.2, %v671_v20  ;;  %v815_v27 = vmul.f32 1.442695, %v793_v21 }
 0x281   :  { %v850_v28 = vsel %vm738_vm4, %v2963_v24, 0.0 }
 0x282   :  { %2400 = vpow2.f32 %v815_v27  ;;  %851 = vadd.xlane.f32.xlu0 %v850_v28  ;;  %776 = vmax.xlane.f32.xlu1 %v775_v30  ;;  %v719_v33 = vsel %vm687_vm1, %v671_v20, %v703_v26 }
 0x283   :  { %v2970_v23 = vadd.f32 %v719_v33, %v2860_v12 }
 0x285   :  { %v373_v34 = vpop.xlane.xlu0 %372  ;;  %v762_v36 = vpop.xlane.xlu1 %761  ;;  %v778_v44 = vsel %vm738_vm4, %v2970_v23, -inf }
 0x286   :  { %v672_v37 = vadd.f32 %v652_v31, %v373_v34  ;;  %v794_v40 = vsub.f32 %v2906_v35, %v762_v36 }
 0x288   :  { %v2973_v42 = vpop.eup %2400  ;;  %vm688_vm3 = vcmp.gt.f32.partialorder %v672_v37, 0.0  ;;  %v704_v43 = vmul.f32 0.2, %v672_v37  ;;  %v817_v41 = vmul.f32 1.442695, %v794_v40 }
 0x289   :  { %v853_v45 = vsel %vm738_vm4, %v2973_v42, 0.0 }
 0x28a   :  { %2402 = vpow2.f32 %v817_v41  ;;  %779 = vmax.xlane.f32.xlu0 %v778_v44  ;;  %854 = vadd.xlane.f32.xlu2 %v853_v45  ;;  %v720_v48 = vsel %vm688_vm3, %v672_v37, %v704_v43 }
 0x28b   :  { %v2980_v60 = vadd.f32 %v720_v48, %v2850_v1 }
 0x28d   :  { %v376_v50 = vpop.xlane.xlu0 %375  ;;  %v781_v2 = vsel %vm738_vm4, %v2980_v60, -inf }
 0x28e   :  { %v673_v35 = vadd.f32 %v655_v49, %v376_v50 }
 0x290   :  { %v2982_v61 = vpop.eup %2402  ;;  %vm689_vm5 = vcmp.gt.f32.partialorder %v673_v35, 0.0  ;;  %v705_v63 = vmul.f32 0.2, %v673_v35 }
 0x291   :  { %v856_v51 = vsel %vm738_vm4, %v2982_v61, 0.0 }
 0x292   :  { %782 = vmax.xlane.f32.xlu2 %v781_v2  ;;  %857 = vadd.xlane.f32.xlu1 %v856_v51  ;;  %v721_v3 = vsel %vm689_vm5, %v673_v35, %v705_v63 }
 0x293   :  { %v2989_v7 = vadd.f32 %v721_v3, %v2860_v12 }
 0x295   :  { %v784_v1 = vsel %vm738_vm4, %v2989_v7, -inf }
 0x29a   :  { %785 = vmax.xlane.f32.xlu1 %v784_v1 }
 0x2cd   :  { %v837_v11 = vpop.xlane.xlu2 %836 }
 0x2ce   :  { %2404 = vrcp.f32 %v837_v11 }
 0x2d1   :  { %v765_v14 = vpop.xlane.xlu1 %764 }
 0x2d2   :  { %v795_v12 = vsub.f32 %v2920_v6, %v765_v14 }
 0x2d4   :  { %v2405_v16 = vpop.eup %2404  ;;  %v819_v19 = vmul.f32 1.442695, %v795_v12 }
 0x2d5   :  { %v899_v20 = vmul.f32 %v2405_v16, %v2915_v62  ;;  %v840_v21 = vpop.xlane.xlu2 %839 }
 0x2d6   :  { %2406 = vpow2.f32 %v819_v19 }
 0x2d7   :  { %2408 = vrcp.f32 %v840_v21  ;;  %2024 = vmatmul.msk.f32.vlgmr.msrb.gmra.mxu1 %vm738_vm4, %v899_v20 }
 0x2d9   :  { %v768_v26 = vpop.xlane.xlu1 %767 }
 0x2da   :  { %v796_v27 = vsub.f32 %v2930_v25, %v768_v26 }
 0x2dc   :  { %v3003_v28 = vpop.eup %2406  ;;  %v821_v30 = vmul.f32 1.442695, %v796_v27 }
 0x2dd   :  { %v2409_v31 = vpop.eup %2408  ;;  %v843_v33 = vpop.xlane.xlu2 %842  ;;  %v859_v6 = vsel %vm738_vm4, %v3003_v28, 0.0 }
 0x2de   :  { %2410 = vpow2.f32 %v821_v30  ;;  %860 = vadd.xlane.f32.xlu0 %v859_v6  ;;  %v900_v62 = vmul.f32 %v2409_v31, %v2925_v15 }
 0x2df   :  { %2412 = vrcp.f32 %v843_v33 }
 0x2e0   :  { %2025 = vmatmul.msk.f32.gmra.mxu1 %vm738_vm4, %v900_v62 }
 0x2e1   :  { %v771_v34 = vpop.xlane.xlu0 %770 }
 0x2e2   :  { %v797_v36 = vsub.f32 %v2940_v39, %v771_v34 }
 0x2e4   :  { %v3010_v37 = vpop.eup %2410  ;;  %v823_v25 = vmul.f32 1.442695, %v797_v36 }
 0x2e5   :  { %v2413_v40 = vpop.eup %2412  ;;  %v846_v43 = vpop.xlane.xlu2 %845  ;;  %v862_v41 = vsel %vm738_vm4, %v3010_v37, 0.0 }
 0x2e6   :  { %2414 = vpow2.f32 %v823_v25  ;;  %863 = vadd.xlane.f32.xlu2 %v862_v41  ;;  %v901_v44 = vmul.f32 %v2413_v40, %v2935_v32 }
 0x2e7   :  { %2416 = vrcp.f32 %v846_v43 }
 0x2e8   :  { %2026 = vmatmul.msk.f32.gmra.mxu1 %vm738_vm4, %v901_v44 }
 0x2ec   :  { %v3016_v15 = vpop.eup %2414 }
 0x2ed   :  { %v2417_v45 = vpop.eup %2416  ;;  %v774_v48 = vpop.xlane.xlu2 %773  ;;  %v865_v49 = vsel %vm738_vm4, %v3016_v15, 0.0 }
 0x2ee   :  { %v849_v39 = vpop.xlane.xlu1 %848  ;;  %v798_v50 = vsub.f32 %v2950_v0, %v774_v48  ;;  %866 = vadd.xlane.f32.xlu0 %v865_v49  ;;  %v902_v35 = vmul.f32 %v2417_v45, %v2945_v46 }
 0x2ef   :  { %2418 = vrcp.f32 %v849_v39 }
 0x2f0   :  { %v825_v63 = vmul.f32 1.442695, %v798_v50  ;;  %2027 = vmatmul.msk.f32.gmra.mxu1 %vm738_vm4, %v902_v35 }
 0x2f2   :  { %2420 = vpow2.f32 %v825_v63 }
 0x2f5   :  { %v2419_v32 = vpop.eup %2418  ;;  %v852_v2 = vpop.xlane.xlu0 %851 }
 0x2f6   :  { %v777_v51 = vpop.xlane.xlu1 %776  ;;  %v903_v3 = vmul.f32 %v2419_v32, %v2953_v4  ;;  %2422 = vrcp.f32 %v852_v2 }
 0x2f7   :  { %v799_v1 = vsub.f32 %v2960_v8, %v777_v51 }
 0x2f8   :  { %v3025_v10 = vpop.eup %2420  ;;  %2028 = vmatmul.msk.f32.gmra.mxu1 %vm738_vm4, %v903_v3 }
 0x2f9   :  { %v827_v18 = vmul.f32 1.442695, %v799_v1  ;;  %v868_v46 = vsel %vm738_vm4, %v3025_v10, 0.0 }
 0x2fa   :  { %869 = vadd.xlane.f32.xlu1 %v868_v46 }
 0x2fb   :  { %2424 = vpow2.f32 %v827_v18 }
 0x2fc   :  { %v2423_v0 = vpop.eup %2422 }
 0x2fd   :  { %v780_v11 = vpop.xlane.xlu0 %779  ;;  %v855_v14 = vpop.xlane.xlu2 %854  ;;  %v904_v12 = vmul.f32 %v2423_v0, %v2963_v24 }
 0x2fe   :  { %v800_v4 = vsub.f32 %v2970_v23, %v780_v11  ;;  %2426 = vrcp.f32 %v855_v14  ;;  %v2321_v11 = vld [vmem:[#allocation2 + $0x38] sm:$0xff] }
 0x2ff   :  { %1729 = vmatpush.bf16.msra.mxu3 %v2321_v11  ;;  %v1034_v14 = vld [vmem:[%s3227_s4 + $0x20] sm:$0xff]  ;;  %v2330_v11 = vld [vmem:[#allocation2 + $0x80] sm:$0xff] }
 0x300   :  { %v829_v8 = vmul.f32 1.442695, %v800_v4  ;;  %2029 = vmatmul.msk.f32.gmra.mxu1 %vm738_vm4, %v904_v12  ;;  %v1035_v12 = vld [vmem:[%s3227_s4 + $0x28] sm:$0xff] }
 0x301   :  { %v3032_v16 = vpop.eup %2424 }
 0x302   :  { %v871_v19 = vsel %vm738_vm4, %v3032_v16, 0.0  ;;  %2428 = vpow2.f32 %v829_v8 }
 0x303   :  { %872 = vadd.xlane.f32.xlu2 %v871_v19  ;;  %v2319_v19 = vld [vmem:[#allocation2 + $0x28] sm:$0xff] }
 0x304   :  { %v2427_v20 = vpop.eup %2426 }
 0x305   :  { %v783_v21 = vpop.xlane.xlu2 %782  ;;  %v858_v26 = vpop.xlane.xlu1 %857  ;;  %v905_v27 = vmul.f32 %v2427_v20, %v2973_v42 }
 0x306   :  { %v801_v24 = vsub.f32 %v2980_v60, %v783_v21  ;;  %2430 = vrcp.f32 %v858_v26 }
 0x308   :  { %v3039_v23 = vpop.eup %2428  ;;  %v831_v30 = vmul.f32 1.442695, %v801_v24  ;;  %2030 = vmatmul.msk.f32.gmra.mxu1 %vm738_vm4, %v905_v27 }
 0x309   :  { %v874_v31 = vsel %vm738_vm4, %v3039_v23, 0.0 }
 0x30a   :  { %2432 = vpow2.f32 %v831_v30  ;;  %875 = vadd.xlane.f32.xlu0 %v874_v31  ;;  %v1037_v31 = vld [vmem:[%s3227_s4 + $0x38] sm:$0xff] }
 0x30c   :  { %v2431_v33 = vpop.eup %2430 }
 0x30d   :  { %v786_v6 = vpop.xlane.xlu1 %785  ;;  %v906_v62 = vmul.f32 %v2431_v33, %v2982_v61  ;;  %v1078_v61 = vld [vmem:[%s3231_s8] sm:$0xff] }
 0x30e   :  { %v802_v34 = vsub.f32 %v2989_v7, %v786_v6  ;;  %1094 = vmatpush.msra.mxu2 %v1078_v61  ;;  %v2328_v61 = vld [vmem:[#allocation2 + $0x70] sm:$0xff] }
 0x30f   :  { %2040 = vmatmul.msk.f32.vlgmr.msra.gmra.mxu2 %vm328_vm2, %v2722_v5  ;;  %v1030_v5 = vld [vmem:[%s3227_s4] sm:$0xff] }
 0x310   :  { %v3046_v42 = vpop.eup %2432  ;;  %v833_v60 = vmul.f32 1.442695, %v802_v34  ;;  %2031 = vmatmul.msk.f32.gmra.mxu1 %vm738_vm4, %v906_v62 }
 0x311   :  { %v877_v36 = vsel %vm738_vm4, %v3046_v42, 0.0 }
 0x312   :  { %2434 = vpow2.f32 %v833_v60  ;;  %878 = vadd.xlane.f32.xlu1 %v877_v36 }
 0x317   :  { %2041 = vmatmul.msk.f32.gmra.mxu2 %vm328_vm2, %v2729_v9  ;;  %v1031_v9 = vld [vmem:[%s3227_s4 + $0x8] sm:$0xff] }
 0x318   :  { %v3051_v25 = vpop.eup %2434 }
 0x319   :  { %v880_v40 = vsel %vm738_vm4, %v3051_v25, 0.0 }
 0x31a   :  { %881 = vadd.xlane.f32.xlu2 %v880_v40 }
 0x31f   :  { %2042 = vmatmul.msk.f32.gmra.mxu2 %vm328_vm2, %v2736_v13 }
 0x327   :  { %2043 = vmatmul.msk.f32.gmra.mxu2 %vm328_vm2, %v2743_v17 }
 0x32f   :  { %2044 = vmatmul.msk.f32.gmra.mxu2 %vm328_vm2, %v2750_v22  ;;  %v1032_v22 = vld [vmem:[%s3227_s4 + $0x10] sm:$0xff] }
 0x337   :  { %2045 = vmatmul.msk.f32.gmra.mxu2 %vm328_vm2, %v2757_v29 }
 0x33f   :  { %2046 = vmatmul.msk.f32.gmra.mxu2 %vm328_vm2, %v2764_v38  ;;  %v2320_v38 = vld [vmem:[#allocation2 + $0x30] sm:$0xff] }
 0x340   :  { %1730 = vmatpush.bf16.msra.mxu3 %v2320_v38  ;;  %v2342_v38 = vld [vmem:[#allocation2 + $0xe0] sm:$0xff] }
 0x344   :  { %1731 = vmatpush.bf16.msra.mxu3 %v2319_v19 }
 0x347   :  { %2047 = vmatmul.msk.f32.gmra.mxu2 %vm328_vm2, %v2771_v47 }
 0x34f   :  { %2048 = vmatmul.msk.f32.gmra.mxu2 %vm328_vm2, %v2794_v52 }
 0x351   :  { %v861_v7 = vpop.xlane.xlu0 %860 }
 0x352   :  { %2436 = vrcp.f32 %v861_v7  ;;  %v2327_v7 = vld [vmem:[#allocation2 + $0x68] sm:$0xff] }
 0x354   :  { %v982_v43 = vpop.f32.mrf.mxu1 }
 0x355   :  { %v1046_v17 = vmul.f32 %v1030_v5, %v982_v43  ;;  %v2326_v43 = vld [vmem:[#allocation2 + $0x60] sm:$0xff]  ;;  %v2323_v5 = vld [vmem:[#allocation2 + $0x48] sm:$0xff] }
 0x357   :  { %2049 = vmatmul.msk.f32.gmra.mxu2 %vm328_vm2, %v2801_v53 }
 0x358   :  { %v2437_v41 = vpop.eup %2436 }
 0x359   :  { %v864_v44 = vpop.xlane.xlu2 %863  ;;  %v907_v45 = vmul.f32 %v2437_v41, %v3003_v28 }
 0x35a   :  { %2438 = vrcp.f32 %v864_v44  ;;  %v2324_v44 = vld [vmem:[#allocation2 + $0x50] sm:$0xff] }
 0x35b   :  { %2032 = vmatmul.msk.f32.gmra.mxu1 %vm738_vm4, %v907_v45  ;;  %v2336_v45 = vld [vmem:[#allocation2 + $0xb0] sm:$0xff] }
 0x35d   :  { %v985_v13 = vpop.f32.mrf.mxu1 }
 0x35e   :  { %v1047_v48 = vmul.f32 %v1031_v9, %v985_v13  ;;  %v2335_v9 = vld [vmem:[#allocation2 + $0xa8] sm:$0xff] }
 0x35f   :  { %2050 = vmatmul.msk.f32.gmra.mxu2 %vm328_vm2, %v2808_v54  ;;  %v2318_v54 = vld [vmem:[#allocation2 + $0x20] sm:$0xff] }
 0x360   :  { %v2439_v39 = vpop.eup %2438  ;;  %v1062_v49 = vpack.c.bf16 %v1047_v48, %v1046_v17  ;;  %1732 = vmatpush.bf16.msra.mxu3 %v2318_v54  ;;  %v2322_v48 = vld [vmem:[#allocation2 + $0x40] sm:$0xff] }
 0x361   :  { %v867_v28 = vpop.xlane.xlu0 %866  ;;  %v908_v50 = vmul.f32 %v2439_v39, %v3010_v37  ;;  %v1033_v37 = vld [vmem:[%s3227_s4 + $0x18] sm:$0xff]  ;;  %v2334_v39 = vld [vmem:[#allocation2 + $0xa0] sm:$0xff] }
 0x362   :  { %1152 = vmatmul.bf16.vlgmr.msrb.gmra.mxu0 %v1062_v49  ;;  %2440 = vrcp.f32 %v867_v28  ;;  %v2333_v49 = vld [vmem:[#allocation2 + $0x98] sm:$0xff] }
 0x363   :  { %2033 = vmatmul.msk.f32.gmra.mxu1 %vm738_vm4, %v908_v50  ;;  %v2345_v28 = vld [vmem:[#allocation2 + $0xf8] sm:$0xff] }
 0x364   :  { %v1038_v50 = vld [vmem:[%s3227_s4 + $0x40] sm:$0xff] }
 0x365   :  { %v988_v35 = vpop.f32.mrf.mxu1 }
 0x366   :  { %v1048_v29 = vmul.f32 %v1032_v22, %v988_v35  ;;  %v1039_v35 = vld [vmem:[%s3227_s4 + $0x48] sm:$0xff] }
 0x367   :  { %2051 = vmatmul.msk.f32.gmra.mxu2 %vm328_vm2, %v2815_v55  ;;  %v2329_v55 = vld [vmem:[#allocation2 + $0x78] sm:$0xff] }
 0x368   :  { %v2441_v63 = vpop.eup %2440  ;;  %1743 = vmatpush.bf16.msra.mxu1 %v2329_v55 }
 0x369   :  { %v909_v32 = vmul.f32 %v2441_v63, %v3016_v15 }
 0x36b   :  { %2034 = vmatmul.msk.f32.gmra.mxu1 %vm738_vm4, %v909_v32 }
 0x36c   :  { %1744 = vmatpush.bf16.msra.mxu1 %v2328_v61  ;;  %v1043_v61 = vld [vmem:[%s3227_s4 + $0x68] sm:$0xff] }
 0x36d   :  { %v991_v2 = vpop.f32.mrf.mxu1  ;;  %v870_v51 = vpop.xlane.xlu1 %869 }
 0x36e   :  { %v1049_v3 = vmul.f32 %v1033_v37, %v991_v2  ;;  %2442 = vrcp.f32 %v870_v51  ;;  %v2332_v2 = vld [vmem:[#allocation2 + $0x90] sm:$0xff] }
 0x36f   :  { %2052 = vmatmul.msk.f32.gmra.mxu2 %vm328_vm2, %v2822_v56  ;;  %v2315_v56 = vld [vmem:[#allocation2 + $0x8] sm:$0xff]  ;;  %v2344_v51 = vld [vmem:[#allocation2 + $0xf0] sm:$0xff] }
 0x370   :  { %v1063_v1 = vpack.c.bf16 %v1049_v3, %v1048_v29  ;;  %1745 = vmatpush.bf16.msra.mxu1 %v2327_v7  ;;  %v2351_v7 = vld [vmem:[#allocation2 + $0x128] sm:$0xff] }
 0x372   :  { %1157 = vmatmul.bf16.gmra.mxu0 %v1063_v1  ;;  %v2331_v1 = vld [vmem:[#allocation2 + $0x88] sm:$0xff] }
 0x374   :  { %v2443_v15 = vpop.eup %2442  ;;  %1746 = vmatpush.bf16.msra.mxu1 %v2326_v43 }
 0x375   :  { %v994_v18 = vpop.f32.mrf.mxu1  ;;  %v910_v0 = vmul.f32 %v2443_v15, %v3025_v10  ;;  %v2343_v15 = vld [vmem:[#allocation2 + $0xe8] sm:$0xff] }
 0x376   :  { %v873_v46 = vpop.xlane.xlu2 %872  ;;  %v1050_v20 = vmul.f32 %v1034_v14, %v994_v18 }
 0x377   :  { %2444 = vrcp.f32 %v873_v46  ;;  %2035 = vmatmul.msk.f32.gmra.mxu1 %vm738_vm4, %v910_v0  ;;  %2053 = vmatmul.msk.f32.gmra.mxu2 %vm328_vm2, %v2829_v57  ;;  %v2314_v57 = vld [vmem:[#allocation2] sm:$0xff] }
 0x37d   :  { %v2445_v4 = vpop.eup %2444  ;;  %v997_v47 = vpop.f32.mrf.mxu1 }
 0x37e   :  { %v876_v10 = vpop.xlane.xlu0 %875  ;;  %v911_v8 = vmul.f32 %v2445_v4, %v3032_v16  ;;  %v1051_v21 = vmul.f32 %v1035_v12, %v997_v47  ;;  %v1036_v16 = vld [vmem:[%s3227_s4 + $0x30] sm:$0xff] }
 0x37f   :  { %2446 = vrcp.f32 %v876_v10  ;;  %2054 = vmatmul.msk.f32.gmra.mxu2 %vm328_vm2, %v2836_v58  ;;  %v2325_v58 = vld [vmem:[#allocation2 + $0x58] sm:$0xff] }
 0x380   :  { %2036 = vmatmul.msk.f32.gmra.mxu1 %vm738_vm4, %v911_v8  ;;  %v1064_v26 = vpack.c.bf16 %v1051_v21, %v1050_v20  ;;  %v2341_v8 = vld [vmem:[#allocation2 + $0xd8] sm:$0xff]  ;;  %v2340_v20 = vld [vmem:[#allocation2 + $0xd0] sm:$0xff]  ;;  %v1040_v21 = vld [vmem:[%s3227_s4 + $0x50] sm:$0xff] }
 0x381   :  { %1747 = vmatpush.bf16.msra.mxu1 %v2325_v58 }
 0x382   :  { %1162 = vmatmul.bf16.gmra.mxu0 %v1064_v26  ;;  %v1041_v26 = vld [vmem:[%s3227_s4 + $0x58] sm:$0xff] }
 0x385   :  { %v2447_v27 = vpop.eup %2446  ;;  %v1000_v24 = vpop.f32.mrf.mxu1  ;;  %1748 = vmatpush.bf16.msra.mxu1 %v2324_v44 }
 0x386   :  { %v879_v52 = vpop.xlane.xlu1 %878  ;;  %v912_v30 = vmul.f32 %v2447_v27, %v3039_v23  ;;  %v1052_v23 = vmul.f32 %v1036_v16, %v1000_v24 }
 0x387   :  { %2448 = vrcp.f32 %v879_v52  ;;  %2055 = vmatmul.msk.f32.gmra.mxu2 %vm328_vm2, %v2843_v59  ;;  %v2337_v59 = vld [vmem:[#allocation2 + $0xb8] sm:$0xff] }
 0x388   :  { %2037 = vmatmul.msk.f32.gmra.mxu1 %vm738_vm4, %v912_v30  ;;  %1757 = vmatpush.bf16.msrb.mxu2 %v2337_v59  ;;  %v2339_v30 = vld [vmem:[#allocation2 + $0xc8] sm:$0xff] }
 0x389   :  { %1749 = vmatpush.bf16.msra.mxu1 %v2323_v5 }
 0x38c   :  { %1758 = vmatpush.bf16.msrb.mxu2 %v2336_v45  ;;  %v2350_v45 = vld [vmem:[#allocation2 + $0x120] sm:$0xff] }
 0x38d   :  { %v2449_v33 = vpop.eup %2448  ;;  %v1003_v53 = vpop.f32.mrf.mxu1  ;;  %1750 = vmatpush.bf16.msra.mxu1 %v2322_v48 }
 0x38e   :  { %v882_v6 = vpop.xlane.xlu2 %881  ;;  %v913_v62 = vmul.f32 %v2449_v33, %v3046_v42  ;;  %v1053_v34 = vmul.f32 %v1037_v31, %v1003_v53  ;;  %v2317_v42 = vld [vmem:[#allocation2 + $0x18] sm:$0xff] }
 0x38f   :  { %2450 = vrcp.f32 %v882_v6  ;;  %1733 = vmatpush.bf16.msra.mxu3 %v2317_v42  ;;  %v2352_v42 = vld [vmem:[#allocation2 + $0x130] sm:$0xff] }
 0x390   :  { %2038 = vmatmul.msk.f32.gmra.mxu1 %vm738_vm4, %v913_v62  ;;  %v1065_v60 = vpack.c.bf16 %v1053_v34, %v1052_v23  ;;  %1759 = vmatpush.bf16.msrb.mxu2 %v2335_v9  ;;  %v2338_v62 = vld [vmem:[#allocation2 + $0xc0] sm:$0xff] }
 0x392   :  { %1167 = vmatmul.bf16.gmra.mxu0 %v1065_v60  ;;  %v1096_v41 = vpop.f32.mrf.mxu2 }
 0x394   :  { %1760 = vmatpush.bf16.msrb.mxu2 %v2334_v39 }
 0x395   :  { %v2451_v36 = vpop.eup %2450 }
 0x396   :  { %v914_v40 = vmul.f32 %v2451_v36, %v3051_v25  ;;  %v2316_v25 = vld [vmem:[#allocation2 + $0x10] sm:$0xff] }
 0x397   :  { %1734 = vmatpush.bf16.msra.mxu3 %v2316_v25  ;;  %v1042_v25 = vld [vmem:[%s3227_s4 + $0x60] sm:$0xff] }
 0x398   :  { %2039 = vmatmul.msk.f32.gmra.mxu1 %vm738_vm4, %v914_v40  ;;  %1761 = vmatpush.bf16.msrb.mxu2 %v2333_v49  ;;  %v2353_v40 = vld [vmem:[#allocation2 + $0x138] sm:$0xff]  ;;  %v1044_v49 = vld [vmem:[%s3227_s4 + $0x70] sm:$0xff] }
 0x399   :  { %1785 = vmatpush.bf16.msrb.mxu1 %v2353_v40  ;;  %v2375_v40 = vld [vmem:[#allocation2 + $0x1e8] sm:$0xff] }
 0x39a   :  { %v1099_v17 = vpop.f32.mrf.mxu2 }
 0x39b   :  { %1735 = vmatpush.bf16.msra.mxu3 %v2315_v56 }
 0x39c   :  { %1762 = vmatpush.bf16.msrb.mxu2 %v2332_v2 }
 0x39d   :  { %1786 = vmatpush.bf16.msrb.mxu1 %v2352_v42  ;;  %v2362_v42 = vld [vmem:[#allocation2 + $0x180] sm:$0xff] }
 0x39f   :  { %1736 = vmatpush.bf16.msra.mxu3 %v2314_v57 }
 0x3a0   :  { %1763 = vmatpush.bf16.msrb.mxu2 %v2331_v1 }
 0x3a1   :  { %1787 = vmatpush.bf16.msrb.mxu1 %v2351_v7  ;;  %v2372_v7 = vld [vmem:[#allocation2 + $0x1d0] sm:$0xff] }
 0x3a2   :  { %v1102_v3 = vpop.f32.mrf.mxu2 }
 0x3a3   :  { %1771 = vmatpush.bf16.msrb.mxu3 %v2345_v28  ;;  %v1045_v28 = vld [vmem:[%s3227_s4 + $0x78] sm:$0xff] }
 0x3a4   :  { %1764 = vmatpush.bf16.msrb.mxu2 %v2330_v11  ;;  %v2360_v11 = vld [vmem:[#allocation2 + $0x170] sm:$0xff] }
 0x3a5   :  { %1788 = vmatpush.bf16.msrb.mxu1 %v2350_v45 }
 0x3a7   :  { %1772 = vmatpush.bf16.msrb.mxu3 %v2344_v51 }
 0x3aa   :  { %v1105_v10 = vpop.f32.mrf.mxu2 }
 0x3ab   :  { %1773 = vmatpush.bf16.msrb.mxu3 %v2343_v15  ;;  %v2349_v15 = vld [vmem:[#allocation2 + $0x118] sm:$0xff] }
 0x3ac   :  { %1789 = vmatpush.bf16.msrb.mxu1 %v2349_v15  ;;  %v1856_v15 = vld [vmem:[%s3233_s10 + $0x78] sm:$0xff] }
 0x3af   :  { %1774 = vmatpush.bf16.msrb.mxu3 %v2342_v38  ;;  %v2346_v38 = vld [vmem:[#allocation2 + $0x100] sm:$0xff] }
 0x3b2   :  { %v1108_v53 = vpop.f32.mrf.mxu2 }
 0x3b3   :  { %1775 = vmatpush.bf16.msrb.mxu3 %v2341_v8  ;;  %v2356_v8 = vld [vmem:[#allocation2 + $0x150] sm:$0xff] }
 0x3b7   :  { %1776 = vmatpush.bf16.msrb.mxu3 %v2340_v20  ;;  %v2355_v20 = vld [vmem:[#allocation2 + $0x148] sm:$0xff] }
 0x3ba   :  { %v1111_v55 = vpop.f32.mrf.mxu2 }
 0x3bb   :  { %1777 = vmatpush.bf16.msrb.mxu3 %v2339_v30  ;;  %v2365_v30 = vld [vmem:[#allocation2 + $0x198] sm:$0xff] }
 0x3bf   :  { %1778 = vmatpush.bf16.msrb.mxu3 %v2338_v62 }
 0x3d8   :  { %v1006_v13 = vpop.f32.mrf.mxu1 }
 0x3d9   :  { %v1054_v22 = vmul.f32 %v1038_v50, %v1006_v13  ;;  %v1114_v13 = vpop.f32.mrf.mxu2 }
 0x3df   :  { %v1153_v63 = vpop.f32.mrf.mxu0 }
 0x3e0   :  { %v1009_v32 = vpop.f32.mrf.mxu1  ;;  %v1154_v18 = vadd.f32 %v1153_v63, %v1096_v41 }
 0x3e1   :  { %v1055_v37 = vmul.f32 %v1039_v35, %v1009_v32  ;;  %v1117_v32 = vpop.f32.mrf.mxu2 }
 0x3e2   :  { %v1193_v14 = vmax.f32 %v1154_v18, 0.0  ;;  %v2348_v18 = vld [vmem:[#allocation2 + $0x110] sm:$0xff] }
 0x3e3   :  { %v1066_v29 = vpack.c.bf16 %v1055_v37, %v1054_v22  ;;  %1790 = vmatpush.bf16.msrb.mxu1 %v2348_v18  ;;  %v1855_v18 = vld [vmem:[%s3233_s10 + $0x70] sm:$0xff] }
 0x3e5   :  { %1172 = vmatmul.bf16.gmra.mxu0 %v1066_v29 }
 0x3e7   :  { %v1155_v46 = vpop.f32.mrf.mxu0 }
 0x3e8   :  { %v1156_v0 = vadd.f32 %v1155_v46, %v1099_v17  ;;  %v1012_v47 = vpop.f32.mrf.mxu1  ;;  %v2361_v46 = vld [vmem:[#allocation2 + $0x178] sm:$0xff] }
 0x3e9   :  { %v1056_v24 = vmul.f32 %v1040_v21, %v1012_v47  ;;  %1799 = vmatpush.bf16.msra.mxu2 %v2361_v46  ;;  %v2369_v47 = vld [vmem:[#allocation2 + $0x1b8] sm:$0xff]  ;;  %v2367_v21 = vld [vmem:[#allocation2 + $0x1a8] sm:$0xff]  ;;  %v1854_v46 = vld [vmem:[%s3233_s10 + $0x68] sm:$0xff] }
 0x3ea   :  { %v1194_v12 = vmax.f32 %v1156_v0, 0.0  ;;  %v2347_v0 = vld [vmem:[#allocation2 + $0x108] sm:$0xff] }
 0x3eb   :  { %1791 = vmatpush.bf16.msrb.mxu1 %v2347_v0  ;;  %v1853_v0 = vld [vmem:[%s3233_s10 + $0x60] sm:$0xff] }
 0x3ec   :  { %v1209_v4 = vpack.c.bf16 %v1194_v12, %v1193_v14  ;;  %v2359_v14 = vld [vmem:[#allocation2 + $0x168] sm:$0xff]  ;;  %v2358_v12 = vld [vmem:[#allocation2 + $0x160] sm:$0xff] }
 0x3ed   :  { %1800 = vmatpush.bf16.msra.mxu2 %v2360_v11  ;;  %v1852_v11 = vld [vmem:[%s3233_s10 + $0x58] sm:$0xff] }
 0x3ee   :  { %1737 = vmatmul.bf16.vlgmr.msra.gmra.mxu3 %v1209_v4  ;;  %v2357_v4 = vld [vmem:[#allocation2 + $0x158] sm:$0xff] }
 0x3ef   :  { %v1158_v19 = vpop.f32.mrf.mxu0  ;;  %1792 = vmatpush.bf16.msrb.mxu1 %v2346_v38  ;;  %1813 = vmatpush.bf16.msra.mxu3 %v2369_v47  ;;  %v1851_v38 = vld [vmem:[%s3233_s10 + $0x50] sm:$0xff] }
 0x3f0   :  { %v1159_v16 = vadd.f32 %v1158_v19, %v1102_v3  ;;  %v2368_v19 = vld [vmem:[#allocation2 + $0x1b0] sm:$0xff] }
 0x3f1   :  { %1801 = vmatpush.bf16.msra.mxu2 %v2359_v14  ;;  %v1850_v14 = vld [vmem:[%s3233_s10 + $0x48] sm:$0xff] }
 0x3f2   :  { %v1195_v23 = vmax.f32 %v1159_v16, 0.0  ;;  %v2377_v16 = vld [vmem:[#allocation2 + $0x1f8] sm:$0xff] }
 0x3f3   :  { %1814 = vmatpush.bf16.msra.mxu3 %v2368_v19  ;;  %v1845_v19 = vld [vmem:[%s3233_s10 + $0x20] sm:$0xff] }
 0x3f4   :  { %v1015_v27 = vpop.f32.mrf.mxu1 }
 0x3f5   :  { %v1057_v52 = vmul.f32 %v1041_v26, %v1015_v27  ;;  %1802 = vmatpush.bf16.msra.mxu2 %v2358_v12  ;;  %v2354_v26 = vld [vmem:[#allocation2 + $0x140] sm:$0xff]  ;;  %v1849_v12 = vld [vmem:[%s3233_s10 + $0x40] sm:$0xff] }
 0x3f6   :  { %v2366_v27 = vld [vmem:[#allocation2 + $0x1a0] sm:$0xff] }
 0x3f7   :  { %v1067_v31 = vpack.c.bf16 %v1057_v52, %v1056_v24  ;;  %v1160_v33 = vpop.f32.mrf.mxu0  ;;  %1815 = vmatpush.bf16.msra.mxu3 %v2367_v21 }
 0x3f8   :  { %v1161_v6 = vadd.f32 %v1160_v33, %v1105_v10  ;;  %v1120_v10 = vpop.f32.mrf.mxu2  ;;  %v2364_v33 = vld [vmem:[#allocation2 + $0x190] sm:$0xff] }
 0x3f9   :  { %1177 = vmatmul.bf16.gmra.mxu0 %v1067_v31  ;;  %1803 = vmatpush.bf16.msra.mxu2 %v2357_v4  ;;  %v1848_v4 = vld [vmem:[%s3233_s10 + $0x38] sm:$0xff] }
 0x3fa   :  { %v1196_v34 = vmax.f32 %v1161_v6, 0.0 }
 0x3fb   :  { %1816 = vmatpush.bf16.msra.mxu3 %v2366_v27 }
 0x3fc   :  { %v1210_v60 = vpack.c.bf16 %v1196_v34, %v1195_v23 }
 0x3fd   :  { %v1018_v36 = vpop.f32.mrf.mxu1  ;;  %1804 = vmatpush.bf16.msra.mxu2 %v2356_v8  ;;  %v1846_v8 = vld [vmem:[%s3233_s10 + $0x28] sm:$0xff] }
 0x3fe   :  { %1751 = vmatmul.bf16.vlgmr.msra.gmra.mxu1 %v1210_v60  ;;  %v1058_v57 = vmul.f32 %v1042_v25, %v1018_v36  ;;  %v2363_v36 = vld [vmem:[#allocation2 + $0x188] sm:$0xff]  ;;  %v2373_v25 = vld [vmem:[#allocation2 + $0x1d8] sm:$0xff] }
 0x3ff   :  { %v1163_v54 = vpop.f32.mrf.mxu0  ;;  %1817 = vmatpush.bf16.msra.mxu3 %v2365_v30  ;;  %1827 = vmatpush.bf16.msra.mxu1 %v2377_v16 }
 0x400   :  { %v1164_v58 = vadd.f32 %v1163_v54, %v1108_v53  ;;  %v1123_v24 = vpop.f32.mrf.mxu2  ;;  %v2376_v53 = vld [vmem:[#allocation2 + $0x1f0] sm:$0xff] }
 0x401   :  { %1805 = vmatpush.bf16.msra.mxu2 %v2355_v20  ;;  %v1844_v20 = vld [vmem:[%s3233_s10 + $0x18] sm:$0xff] }
 0x402   :  { %v1197_v5 = vmax.f32 %v1164_v58, 0.0 }
 0x403   :  { %1818 = vmatpush.bf16.msra.mxu3 %v2364_v33  ;;  %1828 = vmatpush.bf16.msra.mxu1 %v2376_v53 }
 0x405   :  { %v1021_v56 = vpop.f32.mrf.mxu1  ;;  %1806 = vmatpush.bf16.msra.mxu2 %v2354_v26  ;;  %v1843_v26 = vld [vmem:[%s3233_s10 + $0x10] sm:$0xff] }
 0x406   :  { %v1059_v43 = vmul.f32 %v1043_v61, %v1021_v56 }
 0x407   :  { %v1165_v41 = vpop.f32.mrf.mxu0  ;;  %1819 = vmatpush.bf16.msra.mxu3 %v2363_v36  ;;  %1829 = vmatpush.bf16.msra.mxu1 %v2375_v40 }
 0x408   :  { %v1068_v59 = vpack.c.bf16 %v1059_v43, %v1058_v57  ;;  %v1166_v44 = vadd.f32 %v1165_v41, %v1111_v55  ;;  %v1126_v23 = vpop.f32.mrf.mxu2  ;;  %v2374_v55 = vld [vmem:[#allocation2 + $0x1e0] sm:$0xff]  ;;  %v2371_v43 = vld [vmem:[#allocation2 + $0x1c8] sm:$0xff] }
 0x40a   :  { %1182 = vmatmul.bf16.gmra.mxu0 %v1068_v59  ;;  %v1198_v9 = vmax.f32 %v1166_v44, 0.0 }
 0x40b   :  { %1820 = vmatpush.bf16.msra.mxu3 %v2362_v42  ;;  %1830 = vmatpush.bf16.msra.mxu1 %v2374_v55 }
 0x40c   :  { %v1211_v17 = vpack.c.bf16 %v1198_v9, %v1197_v5  ;;  %v2370_v5 = vld [vmem:[#allocation2 + $0x1c0] sm:$0xff] }
 0x40d   :  { %v1024_v48 = vpop.f32.mrf.mxu1 }
 0x40e   :  { %1765 = vmatmul.bf16.vlgmr.msrb.gmra.mxu2 %v1211_v17  ;;  %v1060_v35 = vmul.f32 %v1044_v49, %v1024_v48 }
 0x40f   :  { %v1168_v39 = vpop.f32.mrf.mxu0  ;;  %1831 = vmatpush.bf16.msra.mxu1 %v2373_v25  ;;  %1857 = vmatpush.msrb.mxu2 %v1856_v15 }
 0x410   :  { %v1169_v22 = vadd.f32 %v1168_v39, %v1114_v13  ;;  %v1129_v61 = vpop.f32.mrf.mxu2 }
 0x411   :  { %1858 = vmatpush.msrb.mxu2 %v1855_v18 }
 0x412   :  { %v1199_v29 = vmax.f32 %v1169_v22, 0.0 }
 0x413   :  { %1832 = vmatpush.bf16.msra.mxu1 %v2372_v7  ;;  %1859 = vmatpush.msrb.mxu2 %v1854_v46 }
 0x415   :  { %v1027_v50 = vpop.f32.mrf.mxu1  ;;  %1860 = vmatpush.msrb.mxu2 %v1853_v0 }
 0x416   :  { %v1061_v63 = vmul.f32 %v1045_v28, %v1027_v50 }
 0x417   :  { %v1170_v2 = vpop.f32.mrf.mxu0  ;;  %1833 = vmatpush.bf16.msra.mxu1 %v2371_v43  ;;  %1861 = vmatpush.msrb.mxu2 %v1852_v11 }
 0x418   :  { %v1069_v37 = vpack.c.bf16 %v1061_v63, %v1060_v35  ;;  %v1171_v51 = vadd.f32 %v1170_v2, %v1117_v32  ;;  %v1132_v41 = vpop.f32.mrf.mxu2 }
 0x419   :  { %1862 = vmatpush.msrb.mxu2 %v1851_v38 }
 0x41a   :  { %1187 = vmatmul.bf16.gmra.mxu0 %v1069_v37  ;;  %v1200_v3 = vmax.f32 %v1171_v51, 0.0 }
 0x41b   :  { %1834 = vmatpush.bf16.msra.mxu1 %v2370_v5  ;;  %1863 = vmatpush.msrb.mxu2 %v1850_v14 }
 0x41c   :  { %v1212_v1 = vpack.c.bf16 %v1200_v3, %v1199_v29 }
 0x41d   :  { %1864 = vmatpush.msrb.mxu2 %v1849_v12 }
 0x41e   :  { %1779 = vmatmul.bf16.vlgmr.msrb.gmra.mxu3 %v1212_v1 }
 0x41f   :  { %1865 = vmatpush.msrb.mxu2 %v1848_v4 }
 0x420   :  { %v1135_v17 = vpop.f32.mrf.mxu2 }
 0x428   :  { %v1138_v63 = vpop.f32.mrf.mxu2 }
 0x430   :  { %v1141_v37 = vpop.f32.mrf.mxu2 }
 0x462   :  { %v1173_v52 = vpop.f32.mrf.mxu0 }
 0x463   :  { %v1174_v31 = vadd.f32 %v1173_v52, %v1120_v10  ;;  %v1847_v10 = vld [vmem:[%s3233_s10 + $0x30] sm:$0xff]  ;;  %v1841_v52 = vld [vmem:[%s3233_s10] sm:$0xff] }
 0x464   :  { %1866 = vmatpush.msrb.mxu2 %v1847_v10 }
 0x465   :  { %v1201_v34 = vmax.f32 %v1174_v31, 0.0 }
 0x466   :  { %1867 = vmatpush.msrb.mxu2 %v1846_v8 }
 0x468   :  { %1868 = vmatpush.msrb.mxu2 %v1845_v19 }
 0x46a   :  { %v1175_v6 = vpop.f32.mrf.mxu0  ;;  %1869 = vmatpush.msrb.mxu2 %v1844_v20 }
 0x46b   :  { %v1176_v62 = vadd.f32 %v1175_v6, %v1123_v24  ;;  %v1842_v24 = vld [vmem:[%s3233_s10 + $0x8] sm:$0xff] }
 0x46c   :  { %1870 = vmatpush.msrb.mxu2 %v1843_v26 }
 0x46d   :  { %v1202_v60 = vmax.f32 %v1176_v62, 0.0  ;;  %v2517_v62 = vmov 0  }
 0x46e   :  { %1871 = vmatpush.msrb.mxu2 %v1842_v24  ;;  %2385 = vset.pattern.permute.xlu0 %v2517_v62 }
 0x46f   :  { %v1213_v54 = vpack.c.bf16 %v1202_v60, %v1201_v34  ;;  %2386 = vset.pattern.permute.xlu1 %v2517_v62 }
 0x470   :  { %1872 = vmatpush.msrb.mxu2 %v1841_v52  ;;  %v2387_v52 = vld [vmem:[%s3235_s12] ss:$0 sm:$0xff] }
 0x471   :  { %1793 = vmatmul.bf16.vlgmr.msrb.gmra.mxu1 %v1213_v54  ;;  %v1738_v47 = vpop.f32.mrf.mxu3 }
 0x476   :  { %v1178_v56 = vpop.f32.mrf.mxu0 }
 0x477   :  { %v1179_v57 = vadd.f32 %v1178_v56, %v1126_v23 }
 0x479   :  { %v1203_v44 = vmax.f32 %v1179_v57, 0.0  ;;  %v1740_v27 = vpop.f32.mrf.mxu3 }
 0x47b   :  { %v1752_v21 = vpop.f32.mrf.mxu1 }
 0x47c   :  { %v1753_v23 = vadd.f32 %v1752_v21, %v1738_v47 }
 0x47e   :  { %v1180_v58 = vpop.f32.mrf.mxu0 }
 0x47f   :  { %v1181_v59 = vadd.f32 %v1180_v58, %v1129_v61 }
 0x481   :  { %v1204_v45 = vmax.f32 %v1181_v59, 0.0 }
 0x483   :  { %v1214_v9 = vpack.c.bf16 %v1204_v45, %v1203_v44  ;;  %v1754_v30 = vpop.f32.mrf.mxu1 }
 0x484   :  { %v1755_v55 = vadd.f32 %v1754_v30, %v1740_v27 }
 0x485   :  { %1807 = vmatmul.bf16.vlgmr.msra.gmra.mxu2 %v1214_v9 }
 0x487   :  { %v1183_v13 = vpop.f32.mrf.mxu0 }
 0x488   :  { %v1184_v48 = vadd.f32 %v1183_v13, %v1132_v41  ;;  %v1880_v13 = vld [vmem:[%s3234_s11] sm:$0x1] }
 0x48a   :  { %v1205_v28 = vmax.f32 %v1184_v48, 0.0 }
 0x48f   :  { %v1185_v39 = vpop.f32.mrf.mxu0 }
 0x490   :  { %v1186_v49 = vadd.f32 %v1185_v39, %v1135_v17 }
 0x491   :  { %v1766_v16 = vpop.f32.mrf.mxu2 }
 0x492   :  { %v1206_v50 = vmax.f32 %v1186_v49, 0.0  ;;  %v1767_v34 = vadd.f32 %v1766_v16, %v1753_v23 }
 0x494   :  { %v1215_v35 = vpack.c.bf16 %v1206_v50, %v1205_v28 }
 0x496   :  { %1821 = vmatmul.bf16.vlgmr.msra.gmra.mxu3 %v1215_v35 }
 0x497   :  { %v1188_v32 = vpop.f32.mrf.mxu0 }
 0x498   :  { %v1189_v22 = vadd.f32 %v1188_v32, %v1138_v63  ;;  %v2460_v32 = vld [vmem:[%s3224_s1] sm:$0xff] }
 0x499   :  { %v1768_v53 = vpop.f32.mrf.mxu2 }
 0x49a   :  { %v1207_v29 = vmax.f32 %v1189_v22, 0.0  ;;  %v1769_v61 = vadd.f32 %v1768_v53, %v1755_v55 }
 0x49f   :  { %v1190_v2 = vpop.f32.mrf.mxu0 }
 0x4a0   :  { %v1191_v51 = vadd.f32 %v1190_v2, %v1141_v37 }
 0x4a1   :  { %v1780_v31 = vpop.f32.mrf.mxu3 }
 0x4a2   :  { %v1208_v3 = vmax.f32 %v1191_v51, 0.0  ;;  %v1781_v40 = vadd.f32 %v1780_v31, %v1767_v34 }
 0x4a4   :  { %v1216_v1 = vpack.c.bf16 %v1208_v3, %v1207_v29 }
 0x4a6   :  { %1835 = vmatmul.bf16.vlgmr.msra.gmra.mxu1 %v1216_v1  ;;  %v2461_v1 = vld [vmem:[%s3224_s1 + $0x8] sm:$0xff] }
 0x4a9   :  { %v1782_v6 = vpop.f32.mrf.mxu3 }
 0x4aa   :  { %v1783_v57 = vadd.f32 %v1782_v6, %v1769_v61 }
 0x4ee   :  { %v1794_v33 = vpop.f32.mrf.mxu1 }
 0x4ef   :  { %v1795_v42 = vadd.f32 %v1794_v33, %v1781_v40 }
 0x4f6   :  { %v1796_v60 = vpop.f32.mrf.mxu1 }
 0x4f7   :  { %v1797_v59 = vadd.f32 %v1796_v60, %v1783_v57 }
 0x508   :  { %v1808_v36 = vpop.f32.mrf.mxu2 }
 0x509   :  { %v1809_v25 = vadd.f32 %v1808_v36, %v1795_v42 }
 0x510   :  { %v1810_v58 = vpop.f32.mrf.mxu2 }
 0x511   :  { %v1811_v44 = vadd.f32 %v1810_v58, %v1797_v59 }
 0x519   :  { %v1822_v54 = vpop.f32.mrf.mxu3 }
 0x51a   :  { %v1823_v56 = vadd.f32 %v1822_v54, %v1809_v25 }
 0x521   :  { %v1824_v41 = vpop.f32.mrf.mxu3 }
 0x522   :  { %v1825_v45 = vadd.f32 %v1824_v41, %v1811_v44 }
 0x523   :  { %v1836_v7 = vpop.f32.mrf.mxu1 }
 0x524   :  { %v1837_v43 = vadd.f32 %v1836_v7, %v1823_v56 }
 0x526   :  { %1873 = vmatmul.f32.vlgmr.msrb.gmra.mxu2 %v1837_v43 }
 0x52b   :  { %v1838_v5 = vpop.f32.mrf.mxu1 }
 0x52c   :  { %v1839_v9 = vadd.f32 %v1838_v5, %v1825_v45 }
 0x52e   :  { %1876 = vmatmul.f32.gmra.mxu2 %v1839_v9  ;;  %1895 = vmatpush.xpose.msrb.mxu3 %v1839_v9 }
 0x52f   :  { %1968 = vmatpush.msrb.mxu1 %v1839_v9 }
 0x531   :  { %1969 = vmatpush.msrb.mxu1 %v1837_v43 }
 0x532   :  { %1896 = vmatpush.xpose.msrb.mxu3 %v1837_v43 }
 0x535   :  { %1897 = vmatmul.f32.vlgmr.msrb.gmra.mxu3 %v1880_v13 }
 0x5a9   :  { %v1874_v17 = vpop.f32.mrf.mxu2 }
 0x5aa   :  { %1903 = vperm.xlu0 %2385, %v1874_v17  }
 0x5b1   :  { %v1877_v48 = vpop.f32.mrf.mxu2 }
 0x5b2   :  { %1908 = vperm.xlu1 %2386, %v1877_v48  }
 0x5b8   :  { %v1898_v39 = vpop.f32.mrf.mxu3 }
 0x5b9   :  { %v1911_v49 = vperm.slane %v1898_v39, 0 }
 0x61c   :  { %v1904_v28 = vpop.permute.xlu0 %1903 }
 0x61d   :  { %v1912_v50 = vadd.f32 %v1911_v49, %v1904_v28 }
 0x61f   :  { %vm1914_vm2 = vcmp.gt.f32.partialorder %v1912_v50, 0.0  ;;  %v1916_v35 = vmul.f32 0.2, %v1912_v50 }
 0x621   :  { %v1918_v63 = vsel %vm1914_vm2, %v1912_v50, %v1916_v35 }
 0x622   :  { %v1920_v22 = vadd.f32 %v2460_v32, %v1918_v63 }
 0x624   :  { %v1909_v37 = vpop.permute.xlu1 %1908  ;;  %v1922_v2 = vsel %vm738_vm4, %v1920_v22, -inf }
 0x625   :  { %v1913_v51 = vadd.f32 %v1911_v49, %v1909_v37  ;;  %1923 = vmax.xlane.f32.xlu2 %v1922_v2 }
 0x627   :  { %vm1915_vm6 = vcmp.gt.f32.partialorder %v1913_v51, 0.0  ;;  %v1917_v29 = vmul.f32 0.2, %v1913_v51 }
 0x629   :  { %v1919_v3 = vsel %vm1915_vm6, %v1913_v51, %v1917_v29 }
 0x62a   :  { %v1921_v15 = vadd.f32 %v2461_v1, %v1919_v3 }
 0x62c   :  { %v1925_v18 = vsel %vm738_vm4, %v1921_v15, -inf }
 0x62d   :  { %1926 = vmax.xlane.f32.xlu2 %v1925_v18 }
 0x698   :  { %v1924_v46 = vpop.xlane.xlu2 %1923 }
 0x699   :  { %v1928_v0 = vsub.f32 %v1920_v22, %v1924_v46 }
 0x69b   :  { %v1930_v11 = vmul.f32 1.442695, %v1928_v0 }
 0x69d   :  { %2452 = vpow2.f32 %v1930_v11 }
 0x6a0   :  { %v1927_v38 = vpop.xlane.xlu2 %1926 }
 0x6a1   :  { %v1929_v14 = vsub.f32 %v1921_v15, %v1927_v38 }
 0x6a3   :  { %v2453_v12 = vpop.eup %2452  ;;  %v1932_v4 = vmul.f32 1.442695, %v1929_v14 }
 0x6a4   :  { %v1934_v47 = vsel %vm738_vm4, %v2453_v12, 0.0 }
 0x6a5   :  { %2454 = vpow2.f32 %v1932_v4  ;;  %1935 = vadd.xlane.f32.xlu2 %v1934_v47 }
 0x6ab   :  { %v2455_v10 = vpop.eup %2454 }
 0x6ac   :  { %v1937_v8 = vsel %vm738_vm4, %v2455_v10, 0.0 }
 0x6ad   :  { %1938 = vadd.xlane.f32.xlu2 %v1937_v8 }
 0x718   :  { %v1936_v19 = vpop.xlane.xlu2 %1935 }
 0x719   :  { %2456 = vrcp.f32 %v1936_v19 }
 0x71f   :  { %v2457_v20 = vpop.eup %2456 }
 0x720   :  { %v1942_v21 = vmul.f32 %v2457_v20, %v2453_v12  ;;  %v1939_v26 = vpop.xlane.xlu2 %1938 }
 0x721   :  { %2458 = vrcp.f32 %v1939_v26 }
 0x722   :  { %2312 = vmatmul.msk.f32.vlgmr.msrb.gmra.mxu1 %vm738_vm4, %v1942_v21 }
 0x727   :  { %v2459_v27 = vpop.eup %2458 }
 0x728   :  { %v1943_v24 = vmul.f32 %v2459_v27, %v2455_v10 }
 0x72a   :  { %2313 = vmatmul.msk.f32.gmra.mxu1 %vm738_vm4, %v1943_v24 }
 0x79f   :  { %v1971_v30 = vpop.f32.mrf.mxu1 }
 0x7a0   :  { %v1972_v16 = vadd.f32 %v2387_v52, %v1971_v30 }
 0x7a2   :  { %v1977_v31 = vmax.f32 %v1972_v16, 0.0 }
 0x7a4   :  { %1979 = vst [vmem:[#allocation5] sm:$0xff] %v1977_v31 }
 0x7a7   :  { %v1974_v33 = vpop.f32.mrf.mxu1 }
 0x7a8   :  { %v1975_v53 = vadd.f32 %v2387_v52, %v1974_v33 }
 0x7aa   :  { %v1978_v6 = vmax.f32 %v1975_v53, 0.0 }
 0x7ac   :  { %1980 = vst [vmem:[#allocation5 + $0x8] sm:$0xff] %v1978_v6 }
 0x7ad   :  { %1993 = dma.vmem_to_hbm [thread:$0]  %s1986_s19, 256, %s1988_s0, [#allocation4], %s2519_s5, %s2519_s5, %s2520_s3  }
 0x7ae   :  { %2512 = dma.done.wait [#allocation4], 256  }
 0x7af   :  { %2513 = vsyncadd [#allocation4], 4294967040 }
 0x7b0   :  { %1998 = vsyncpa [#allocation3], 1 }
 0x7b1   :  { %1999 = vsyncpa [#allocation4], 1 }

</bundles_post_ra>
